<compile_context>
chip_gen: v6e
topology: v6e:2x2x1
jax: 0.10.0
libtpu: 0.0.40
codegen_flags: <defaults>
</compile_context>

<pallas_src>
import functools

import jax
import jax.numpy as jnp
import numpy as np
from jax.experimental import pallas as pl
from jax.experimental.pallas import tpu as pltpu


def _round_up(x, m):
    return (x + m - 1) // m * m


# ----------------------------------------------------------------------------
# Fused Pallas kernel: the whole DFSMN forward for one block of whole batch
# elements (rows = batches_per_block * T, features zero-padded to 128 lanes).
# ----------------------------------------------------------------------------
def _dfsmn_fused_kernel(x_ref, mw_ref, w1_ref, b1_ref, w2_ref, b2_ref,
                        gamma_ref, beta_ref, out_ref, skip_ref,
                        *, n_layers, memory_size, seq_len, ln_dims):
    h = x_ref[...]                                   # (R, Fpad) fp32
    rows = h.shape[0]
    p_width = skip_ref.shape[-1]                     # Ppad

    # Time index of each row inside its batch element (row blocks hold whole
    # batch elements, so t = row % seq_len).  Built once, reused by every tap.
    t_idx = jax.lax.broadcasted_iota(jnp.int32, (rows, p_width), 0) % seq_len
    mw = mw_ref[...]                                 # (memory_size, 1, Ppad)

    for layer in range(n_layers):                    # static unroll over layers
        # ---- W1 projection ------------------------------------------------ MXU
        p = jnp.dot(h, w1_ref[layer],
                    preferred_element_type=jnp.float32) + b1_ref[layer]

        if layer == 0:
            # ---- causal depthwise memory conv (layer 0 only) --------- XLU/VPU
            #   h_hat[t, c] = sum_s p[t - s, c] * mw_k[memory_size - 1 - s, c]
            acc = p * mw[memory_size - 1]                       # s = 0 tap
            for s in range(1, memory_size):
                shifted = pltpu.roll(p, s, 0)        # row t now holds p[t - s]
                shifted = jnp.where(t_idx >= s, shifted, 0.0)   # causal + batch edge
                acc = acc + shifted * mw[memory_size - 1 - s]
            # layer-0 p_hat == the skip_conn the module threads through DFSMN
            skip_ref[...] = acc.astype(skip_ref.dtype)

        # ---- W2 expansion --------------------------------------------------- MXU
        hc = jnp.dot(p, w2_ref[layer],
                     preferred_element_type=jnp.float32) + b2_ref[layer]

        # ---- LayerNorm over the real (unpadded) feature width --------------- VPU
        c_real = ln_dims[layer]
        inv_c = 1.0 / c_real
        col = jax.lax.broadcasted_iota(jnp.int32, hc.shape, 1)
        mean = jnp.sum(hc, axis=-1, keepdims=True) * inv_c       # pad cols are 0
        centered = jnp.where(col < c_real, hc - mean, 0.0)
        var = jnp.sum(centered * centered, axis=-1, keepdims=True) * inv_c
        h = (centered * jax.lax.rsqrt(var + 1e-5)
             * gamma_ref[layer] + beta_ref[layer])    # pad cols stay exactly 0

    out_ref[...] = h.astype(out_ref.dtype)


# ----------------------------------------------------------------------------
# Wrapper: pad/stack params, flatten batch into rows, launch the fused kernel.
# ----------------------------------------------------------------------------
def _pick_batches_per_block(batch, seq_len, target_rows=256):
    bpb = max(1, min(batch, target_rows // max(seq_len, 1)))
    if batch >= 2:
        # keep at least two grid programs so both v7x TensorCores get work
        bpb = max(1, min(bpb, batch // 2))
    while bpb > 1 and batch % bpb:
        bpb -= 1
    if (bpb * seq_len) % 8 and bpb != batch:
        # fall back to one full-extent block (no (8,128) divisibility needed)
        bpb = batch
    return bpb


def dfsmn_forward(x, params, memory_size):
    """Fused DFSMN forward.

    Returns (out, skip_conn): `out` is what DFSMN.forward(x) returns; skip_conn
    (layer-0 p_hat) is the internal tensor the module threads through its layers,
    emitted additionally for validation.
    """
    B, T, c_in = x.shape
    n_layers = len(params)
    proj = params[0]["w1"].shape[1]
    feat_dims = [params[0]["w1"].shape[0]] + [lp["w2"].shape[1] for lp in params]
    f_pad = _round_up(max(feat_dims), 128)
    p_pad = _round_up(proj, 128)
    ln_dims = tuple(int(lp["w2"].shape[1]) for lp in params)

    def pad2(a, r, c):
        return jnp.pad(a, ((0, r - a.shape[0]), (0, c - a.shape[1])))

    # Stack + zero-pad parameters once (outside the kernel).
    w1s = jnp.stack([pad2(lp["w1"], f_pad, p_pad) for lp in params])
    w2s = jnp.stack([pad2(lp["w2"], p_pad, f_pad) for lp in params])
    b1s = jnp.stack([pad2(lp["b1"].reshape(1, -1), 1, p_pad) for lp in params])
    b2s = jnp.stack([pad2(lp["b2"].reshape(1, -1), 1, f_pad) for lp in params])
    gms = jnp.stack([pad2(lp["gamma"].reshape(1, -1), 1, f_pad) for lp in params])
    bts = jnp.stack([pad2(lp["beta"].reshape(1, -1), 1, f_pad) for lp in params])
    # torch memory_weights (P, 1, mem) -> (mem, 1, Ppad), mw_k[k, 0, c] = w[c, 0, k]
    mw_k = jnp.transpose(params[0]["mw"][:, 0, :], (1, 0))          # (mem, P)
    mw_k = pad2(mw_k, memory_size, p_pad)[:, None, :]               # (mem, 1, Ppad)

    # Flatten batch into the matmul M dimension, pad features to 128 lanes.
    x_flat = jnp.pad(x.reshape(B * T, c_in).astype(jnp.float32),
                     ((0, 0), (0, f_pad - c_in)))

    bpb = _pick_batches_per_block(B, T)
    rows = bpb * T
    grid = (B // bpb,)

    kernel = functools.partial(
        _dfsmn_fused_kernel, n_layers=n_layers, memory_size=memory_size,
        seq_len=T, ln_dims=ln_dims)

    rep3 = lambda i: (0, 0, 0)   # weights replicated (resident) across the grid

    out_pad, skip_pad = pl.pallas_call(
        kernel,
        out_shape=(jax.ShapeDtypeStruct((B * T, f_pad), jnp.float32),
                   jax.ShapeDtypeStruct((B * T, p_pad), jnp.float32)),
        grid=grid,
        in_specs=[
            pl.BlockSpec((rows, f_pad), lambda i: (i, 0)),           # x rows
            pl.BlockSpec((memory_size, 1, p_pad), rep3),             # memory weights
            pl.BlockSpec((n_layers, f_pad, p_pad), rep3),            # W1 stack
            pl.BlockSpec((n_layers, 1, p_pad), rep3),                # b1 stack
            pl.BlockSpec((n_layers, p_pad, f_pad), rep3),            # W2 stack
            pl.BlockSpec((n_layers, 1, f_pad), rep3),                # b2 stack
            pl.BlockSpec((n_layers, 1, f_pad), rep3),                # LN gamma stack
            pl.BlockSpec((n_layers, 1, f_pad), rep3),                # LN beta stack
        ],
        out_specs=(pl.BlockSpec((rows, f_pad), lambda i: (i, 0)),
                   pl.BlockSpec((rows, p_pad), lambda i: (i, 0))),
        compiler_params=pltpu.CompilerParams(
            dimension_semantics=("parallel",)),
    )(x_flat, mw_k, w1s, b1s, w2s, b2s, gms, bts)

    out = out_pad[:, :feat_dims[-1]].reshape(B, T, feat_dims[-1])
    skip = skip_pad[:, :proj].reshape(B, T, proj)
    return out, skip


# ----------------------------------------------------------------------------
# Parameter construction (deterministic, mirrors the PyTorch __init__)
# ----------------------------------------------------------------------------
def xavier_uniform(key, shape, fan_in, fan_out):
    limit = float(np.sqrt(6.0 / (fan_in + fan_out)))
    return jax.random.uniform(key, shape, jnp.float32, -limit, limit)


def make_block_params(key, memory_size, input_size, output_size, projection_size):
    k1, k2, k3 = jax.random.split(key, 3)
    w1 = xavier_uniform(k1, (input_size, projection_size), input_size, projection_size)
    w2 = xavier_uniform(k2, (projection_size, output_size), projection_size, output_size)
    b1 = jnp.ones((projection_size,), jnp.float32)     # nn.init.ones_
    b2 = jnp.ones((output_size,), jnp.float32)         # nn.init.ones_
    # torch shape (P, 1, memory_size); torch xavier fans for a conv weight
    mw = xavier_uniform(k3, (projection_size, 1, memory_size),
                        1 * memory_size, projection_size * memory_size)
    gamma = jnp.ones((output_size,), jnp.float32)       # nn.LayerNorm weight
    beta = jnp.zeros((output_size,), jnp.float32)       # nn.LayerNorm bias
    return dict(w1=w1, b1=b1, w2=w2, b2=b2, mw=mw, gamma=gamma, beta=beta)


def make_dfsmn_params(key, memory_size, input_size, hidden_size, output_size,
                      projection_size, n_layers):
    keys = jax.random.split(key, n_layers)
    params = [make_block_params(keys[0], memory_size, input_size, hidden_size,
                                projection_size)]
    for i in range(1, n_layers - 1):
        params.append(make_block_params(keys[i], memory_size, hidden_size,
                                        hidden_size, projection_size))
    params.append(make_block_params(keys[n_layers - 1], memory_size, hidden_size,
                                    output_size, projection_size))
    return params


# ----------------------------------------------------------------------------
# Pure-JAX reference (faithful to the PyTorch control flow)
# ----------------------------------------------------------------------------
def ref_dfsmn(x, params, memory_size):
    skip_conn = None
    h_in = x
    for li, lp in enumerate(params):
        p = h_in @ lp["w1"] + lp["b1"]
        T = p.shape[1]
        p_padded = jnp.pad(p, ((0, 0), (memory_size - 1, 0), (0, 0)))
        mw_k = jnp.transpose(lp["mw"][:, 0, :], (1, 0))          # (mem, P)
        h_hat = jnp.zeros_like(p)
        for k in range(memory_size):
            h_hat = h_hat + p_padded[:, k:k + T, :] * mw_k[k][None, None, :]
        p_hat = h_hat if skip_conn is None else h_hat + skip_conn
        h = p @ lp["w2"] + lp["b2"]
        mean = h.mean(-1, keepdims=True)
        var = ((h - mean) ** 2).mean(-1, keepdims=True)
        h_in = (h - mean) * jax.lax.rsqrt(var + 1e-5) * lp["gamma"] + lp["beta"]
        if li == 0:
            skip_conn = p_hat
    return h_in, skip_conn


# ----------------------------------------------------------------------------
if __name__ == "__main__":
    memory_size = 8
    input_size = 32
    hidden_size = 64
    output_size = 32
    projection_size = 48
    n_layers = 3
    B, T = 2, 16

    root = jax.random.PRNGKey(0)
    kx, kp = jax.random.split(root)
    x = jax.random.normal(kx, (B, T, input_size), jnp.float32)
    params = make_dfsmn_params(kp, memory_size, input_size, hidden_size,
                               output_size, projection_size, n_layers)

    out, skip = dfsmn_forward(x, params, memory_size)
    out, skip = jax.block_until_ready((out, skip))
    assert out.shape == (B, T, output_size), out.shape
    assert skip.shape == (B, T, projection_size), skip.shape

    ref_out, ref_skip = ref_dfsmn(x, params, memory_size)
    np.testing.assert_allclose(np.asarray(out), np.asarray(ref_out),
                               rtol=1e-4, atol=1e-4)
    np.testing.assert_allclose(np.asarray(skip), np.asarray(ref_skip),
                               rtol=1e-4, atol=1e-4)

    print("KERNEL_OK")
</pallas_src>

<mosaic_0001>
module attributes {stable_mosaic.version = 11 : i64} {
  func.func @_dfsmn_fused_kernel(%arg0: i32, %arg1: memref<16x128xf32, #tpu.memory_space<vmem>>, %arg2: memref<8x1x128xf32, #tpu.memory_space<vmem>>, %arg3: memref<3x128x128xf32, #tpu.memory_space<vmem>>, %arg4: memref<3x1x128xf32, #tpu.memory_space<vmem>>, %arg5: memref<3x128x128xf32, #tpu.memory_space<vmem>>, %arg6: memref<3x1x128xf32, #tpu.memory_space<vmem>>, %arg7: memref<3x1x128xf32, #tpu.memory_space<vmem>>, %arg8: memref<3x1x128xf32, #tpu.memory_space<vmem>>, %arg9: memref<16x128xf32, #tpu.memory_space<vmem>>, %arg10: memref<16x128xf32, #tpu.memory_space<vmem>>) attributes {dimension_semantics = [#tpu.dimension_semantics<parallel>], iteration_bounds = array<i64: 2>, scalar_prefetch = 0 : i64, scratch_operands = 0 : i64, tpu.core_type = #tpu.core_type<tc>, window_params = [{transform_indices = @transform_0, window_bounds = array<i64: 16, 128>}, {pipeline_mode = #tpu.pipeline_mode<synchronous>, transform_indices = @transform_1, window_bounds = array<i64: 8, 1, 128>}, {pipeline_mode = #tpu.pipeline_mode<synchronous>, transform_indices = @transform_2, window_bounds = array<i64: 3, 128, 128>}, {pipeline_mode = #tpu.pipeline_mode<synchronous>, transform_indices = @transform_3, window_bounds = array<i64: 3, 1, 128>}, {pipeline_mode = #tpu.pipeline_mode<synchronous>, transform_indices = @transform_4, window_bounds = array<i64: 3, 128, 128>}, {pipeline_mode = #tpu.pipeline_mode<synchronous>, transform_indices = @transform_5, window_bounds = array<i64: 3, 1, 128>}, {pipeline_mode = #tpu.pipeline_mode<synchronous>, transform_indices = @transform_6, window_bounds = array<i64: 3, 1, 128>}, {pipeline_mode = #tpu.pipeline_mode<synchronous>, transform_indices = @transform_7, window_bounds = array<i64: 3, 1, 128>}, {transform_indices = @transform_8, window_bounds = array<i64: 16, 128>}, {transform_indices = @transform_9, window_bounds = array<i64: 16, 128>}]} {
    %c0 = arith.constant 0 : index
    %c0_0 = arith.constant 0 : index
    %0 = vector.load %arg1[%c0, %c0_0] : memref<16x128xf32, #tpu.memory_space<vmem>>, vector<16x128xf32>
    %1 = tpu.iota {dimensions = array<i32: 0>} : vector<16x128xi32>
    %c16_i32 = arith.constant 16 : i32
    %c0_i32 = arith.constant 0 : i32
    %2 = arith.cmpi eq, %c16_i32, %c0_i32 : i32
    %c1_i32 = arith.constant 1 : i32
    %3 = arith.select %2, %c1_i32, %c16_i32 : i32
    %4 = vector.broadcast %3 : i32 to vector<16x128xi32>
    %5 = arith.remsi %1, %4 : vector<16x128xi32>
    %c0_i32_1 = arith.constant 0 : i32
    %6 = vector.broadcast %c0_i32_1 : i32 to vector<16x128xi32>
    %7 = arith.cmpi ne, %5, %6 : vector<16x128xi32>
    %c0_i32_2 = arith.constant 0 : i32
    %8 = vector.broadcast %c0_i32_2 : i32 to vector<16x128xi32>
    %9 = arith.cmpi slt, %5, %8 : vector<16x128xi32>
    %c0_i32_3 = arith.constant 0 : i32
    %10 = arith.cmpi slt, %3, %c0_i32_3 : i32
    %11 = vector.broadcast %10 : i1 to vector<16x128xi1>
    %12 = vector.broadcast %11 : vector<16x128xi1> to vector<16x128xi1>
    %13 = arith.xori %9, %12 : vector<16x128xi1>
    %14 = arith.andi %13, %7 : vector<16x128xi1>
    %15 = vector.broadcast %3 : i32 to vector<16x128xi32>
    %16 = arith.addi %5, %15 : vector<16x128xi32>
    %17 = arith.select %14, %16, %5 : vector<16x128xi1>, vector<16x128xi32>
    %c0_4 = arith.constant 0 : index
    %c0_5 = arith.constant 0 : index
    %c0_6 = arith.constant 0 : index
    %18 = vector.load %arg2[%c0_4, %c0_5, %c0_6] : memref<8x1x128xf32, #tpu.memory_space<vmem>>, vector<8x1x128xf32>
    %c0_7 = arith.constant 0 : index
    %c0_8 = arith.constant 0 : index
    %c0_9 = arith.constant 0 : index
    %19 = vector.load %arg3[%c0_7, %c0_8, %c0_9] : memref<3x128x128xf32, #tpu.memory_space<vmem>>, vector<1x128x128xf32>
    %20 = vector.shape_cast %19 : vector<1x128x128xf32> to vector<128x128xf32>
    %cst = arith.constant dense<0.000000e+00> : vector<16x128xf32>
    %21 = tpu.matmul %0, %20, %cst {dimension_numbers = #tpu.dot_dimension_numbers<[1], [0], [0], [1], [0, 0, 1, 1], [], []>} : vector<16x128xf32>, vector<128x128xf32>, vector<16x128xf32> -> vector<16x128xf32>
    %c0_10 = arith.constant 0 : index
    %c0_11 = arith.constant 0 : index
    %c0_12 = arith.constant 0 : index
    %22 = vector.load %arg4[%c0_10, %c0_11, %c0_12] : memref<3x1x128xf32, #tpu.memory_space<vmem>>, vector<1x1x128xf32>
    %23 = vector.shape_cast %22 : vector<1x1x128xf32> to vector<1x128xf32>
    %24 = vector.broadcast %23 : vector<1x128xf32> to vector<16x128xf32>
    %25 = arith.addf %21, %24 : vector<16x128xf32>
    %26 = vector.extract_strided_slice %18 {offsets = [7, 0, 0], sizes = [1, 1, 128], strides = [1, 1, 1]} : vector<8x1x128xf32> to vector<1x1x128xf32>
    %27 = vector.shape_cast %26 : vector<1x1x128xf32> to vector<1x128xf32>
    %28 = vector.broadcast %27 : vector<1x128xf32> to vector<16x128xf32>
    %29 = arith.mulf %25, %28 : vector<16x128xf32>
    %c1_i32_13 = arith.constant 1 : i32
    %30 = tpu.dynamic_rotate %25 by %c1_i32_13 dim 0 : vector<16x128xf32>, i32 -> vector<16x128xf32>
    %c1_i32_14 = arith.constant 1 : i32
    %31 = vector.broadcast %c1_i32_14 : i32 to vector<16x128xi32>
    %32 = arith.cmpi sge, %17, %31 : vector<16x128xi32>
    %cst_15 = arith.constant 0.000000e+00 : f32
    %33 = vector.broadcast %cst_15 : f32 to vector<16x128xf32>
    %34 = arith.select %32, %30, %33 : vector<16x128xi1>, vector<16x128xf32>
    %35 = vector.extract_strided_slice %18 {offsets = [6, 0, 0], sizes = [1, 1, 128], strides = [1, 1, 1]} : vector<8x1x128xf32> to vector<1x1x128xf32>
    %36 = vector.shape_cast %35 : vector<1x1x128xf32> to vector<1x128xf32>
    %37 = vector.broadcast %36 : vector<1x128xf32> to vector<16x128xf32>
    %38 = arith.mulf %34, %37 : vector<16x128xf32>
    %39 = arith.addf %29, %38 : vector<16x128xf32>
    %c2_i32 = arith.constant 2 : i32
    %40 = tpu.dynamic_rotate %25 by %c2_i32 dim 0 : vector<16x128xf32>, i32 -> vector<16x128xf32>
    %c2_i32_16 = arith.constant 2 : i32
    %41 = vector.broadcast %c2_i32_16 : i32 to vector<16x128xi32>
    %42 = arith.cmpi sge, %17, %41 : vector<16x128xi32>
    %cst_17 = arith.constant 0.000000e+00 : f32
    %43 = vector.broadcast %cst_17 : f32 to vector<16x128xf32>
    %44 = arith.select %42, %40, %43 : vector<16x128xi1>, vector<16x128xf32>
    %45 = vector.extract_strided_slice %18 {offsets = [5, 0, 0], sizes = [1, 1, 128], strides = [1, 1, 1]} : vector<8x1x128xf32> to vector<1x1x128xf32>
    %46 = vector.shape_cast %45 : vector<1x1x128xf32> to vector<1x128xf32>
    %47 = vector.broadcast %46 : vector<1x128xf32> to vector<16x128xf32>
    %48 = arith.mulf %44, %47 : vector<16x128xf32>
    %49 = arith.addf %39, %48 : vector<16x128xf32>
    %c3_i32 = arith.constant 3 : i32
    %50 = tpu.dynamic_rotate %25 by %c3_i32 dim 0 : vector<16x128xf32>, i32 -> vector<16x128xf32>
    %c3_i32_18 = arith.constant 3 : i32
    %51 = vector.broadcast %c3_i32_18 : i32 to vector<16x128xi32>
    %52 = arith.cmpi sge, %17, %51 : vector<16x128xi32>
    %cst_19 = arith.constant 0.000000e+00 : f32
    %53 = vector.broadcast %cst_19 : f32 to vector<16x128xf32>
    %54 = arith.select %52, %50, %53 : vector<16x128xi1>, vector<16x128xf32>
    %55 = vector.extract_strided_slice %18 {offsets = [4, 0, 0], sizes = [1, 1, 128], strides = [1, 1, 1]} : vector<8x1x128xf32> to vector<1x1x128xf32>
    %56 = vector.shape_cast %55 : vector<1x1x128xf32> to vector<1x128xf32>
    %57 = vector.broadcast %56 : vector<1x128xf32> to vector<16x128xf32>
    %58 = arith.mulf %54, %57 : vector<16x128xf32>
    %59 = arith.addf %49, %58 : vector<16x128xf32>
    %c4_i32 = arith.constant 4 : i32
    %60 = tpu.dynamic_rotate %25 by %c4_i32 dim 0 : vector<16x128xf32>, i32 -> vector<16x128xf32>
    %c4_i32_20 = arith.constant 4 : i32
    %61 = vector.broadcast %c4_i32_20 : i32 to vector<16x128xi32>
    %62 = arith.cmpi sge, %17, %61 : vector<16x128xi32>
    %cst_21 = arith.constant 0.000000e+00 : f32
    %63 = vector.broadcast %cst_21 : f32 to vector<16x128xf32>
    %64 = arith.select %62, %60, %63 : vector<16x128xi1>, vector<16x128xf32>
    %65 = vector.extract_strided_slice %18 {offsets = [3, 0, 0], sizes = [1, 1, 128], strides = [1, 1, 1]} : vector<8x1x128xf32> to vector<1x1x128xf32>
    %66 = vector.shape_cast %65 : vector<1x1x128xf32> to vector<1x128xf32>
    %67 = vector.broadcast %66 : vector<1x128xf32> to vector<16x128xf32>
    %68 = arith.mulf %64, %67 : vector<16x128xf32>
    %69 = arith.addf %59, %68 : vector<16x128xf32>
    %c5_i32 = arith.constant 5 : i32
    %70 = tpu.dynamic_rotate %25 by %c5_i32 dim 0 : vector<16x128xf32>, i32 -> vector<16x128xf32>
    %c5_i32_22 = arith.constant 5 : i32
    %71 = vector.broadcast %c5_i32_22 : i32 to vector<16x128xi32>
    %72 = arith.cmpi sge, %17, %71 : vector<16x128xi32>
    %cst_23 = arith.constant 0.000000e+00 : f32
    %73 = vector.broadcast %cst_23 : f32 to vector<16x128xf32>
    %74 = arith.select %72, %70, %73 : vector<16x128xi1>, vector<16x128xf32>
    %75 = vector.extract_strided_slice %18 {offsets = [2, 0, 0], sizes = [1, 1, 128], strides = [1, 1, 1]} : vector<8x1x128xf32> to vector<1x1x128xf32>
    %76 = vector.shape_cast %75 : vector<1x1x128xf32> to vector<1x128xf32>
    %77 = vector.broadcast %76 : vector<1x128xf32> to vector<16x128xf32>
    %78 = arith.mulf %74, %77 : vector<16x128xf32>
    %79 = arith.addf %69, %78 : vector<16x128xf32>
    %c6_i32 = arith.constant 6 : i32
    %80 = tpu.dynamic_rotate %25 by %c6_i32 dim 0 : vector<16x128xf32>, i32 -> vector<16x128xf32>
    %c6_i32_24 = arith.constant 6 : i32
    %81 = vector.broadcast %c6_i32_24 : i32 to vector<16x128xi32>
    %82 = arith.cmpi sge, %17, %81 : vector<16x128xi32>
    %cst_25 = arith.constant 0.000000e+00 : f32
    %83 = vector.broadcast %cst_25 : f32 to vector<16x128xf32>
    %84 = arith.select %82, %80, %83 : vector<16x128xi1>, vector<16x128xf32>
    %85 = vector.extract_strided_slice %18 {offsets = [1, 0, 0], sizes = [1, 1, 128], strides = [1, 1, 1]} : vector<8x1x128xf32> to vector<1x1x128xf32>
    %86 = vector.shape_cast %85 : vector<1x1x128xf32> to vector<1x128xf32>
    %87 = vector.broadcast %86 : vector<1x128xf32> to vector<16x128xf32>
    %88 = arith.mulf %84, %87 : vector<16x128xf32>
    %89 = arith.addf %79, %88 : vector<16x128xf32>
    %c7_i32 = arith.constant 7 : i32
    %90 = tpu.dynamic_rotate %25 by %c7_i32 dim 0 : vector<16x128xf32>, i32 -> vector<16x128xf32>
    %c7_i32_26 = arith.constant 7 : i32
    %91 = vector.broadcast %c7_i32_26 : i32 to vector<16x128xi32>
    %92 = arith.cmpi sge, %17, %91 : vector<16x128xi32>
    %cst_27 = arith.constant 0.000000e+00 : f32
    %93 = vector.broadcast %cst_27 : f32 to vector<16x128xf32>
    %94 = arith.select %92, %90, %93 : vector<16x128xi1>, vector<16x128xf32>
    %95 = vector.extract_strided_slice %18 {offsets = [0, 0, 0], sizes = [1, 1, 128], strides = [1, 1, 1]} : vector<8x1x128xf32> to vector<1x1x128xf32>
    %96 = vector.shape_cast %95 : vector<1x1x128xf32> to vector<1x128xf32>
    %97 = vector.broadcast %96 : vector<1x128xf32> to vector<16x128xf32>
    %98 = arith.mulf %94, %97 : vector<16x128xf32>
    %99 = arith.addf %89, %98 : vector<16x128xf32>
    %c0_28 = arith.constant 0 : index
    %c0_29 = arith.constant 0 : index
    %100 = vector.load %arg10[%c0_28, %c0_29] : memref<16x128xf32, #tpu.memory_space<vmem>>, vector<16x128xf32>
    tpu.vector_store %arg10[%c0_28, %c0_29], %99 {strides = array<i32>} : memref<16x128xf32, #tpu.memory_space<vmem>>, vector<16x128xf32>,
    %c0_30 = arith.constant 0 : index
    %c0_31 = arith.constant 0 : index
    %c0_32 = arith.constant 0 : index
    %101 = vector.load %arg5[%c0_30, %c0_31, %c0_32] : memref<3x128x128xf32, #tpu.memory_space<vmem>>, vector<1x128x128xf32>
    %102 = vector.shape_cast %101 : vector<1x128x128xf32> to vector<128x128xf32>
    %cst_33 = arith.constant dense<0.000000e+00> : vector<16x128xf32>
    %103 = tpu.matmul %25, %102, %cst_33 {dimension_numbers = #tpu.dot_dimension_numbers<[1], [0], [0], [1], [0, 0, 1, 1], [], []>} : vector<16x128xf32>, vector<128x128xf32>, vector<16x128xf32> -> vector<16x128xf32>
    %c0_34 = arith.constant 0 : index
    %c0_35 = arith.constant 0 : index
    %c0_36 = arith.constant 0 : index
    %104 = vector.load %arg6[%c0_34, %c0_35, %c0_36] : memref<3x1x128xf32, #tpu.memory_space<vmem>>, vector<1x1x128xf32>
    %105 = vector.shape_cast %104 : vector<1x1x128xf32> to vector<1x128xf32>
    %106 = vector.broadcast %105 : vector<1x128xf32> to vector<16x128xf32>
    %107 = arith.addf %103, %106 : vector<16x128xf32>
    %108 = tpu.iota {dimensions = array<i32: 1>} : vector<16x128xi32>
    %cst_37 = arith.constant dense<0.000000e+00> : vector<16xf32>
    %109 = vector.multi_reduction <add>, %107, %cst_37 [1] : vector<16x128xf32> to vector<16xf32>
    %110 = vector.shape_cast %109 : vector<16xf32> to vector<16x1xf32>
    %cst_38 = arith.constant 1.562500e-02 : f32
    %111 = vector.broadcast %cst_38 : f32 to vector<16x1xf32>
    %112 = arith.mulf %110, %111 : vector<16x1xf32>
    %c64_i32 = arith.constant 64 : i32
    %113 = vector.broadcast %c64_i32 : i32 to vector<16x128xi32>
    %114 = arith.cmpi slt, %108, %113 : vector<16x128xi32>
    %115 = vector.broadcast %112 : vector<16x1xf32> to vector<16x128xf32>
    %116 = arith.subf %107, %115 : vector<16x128xf32>
    %cst_39 = arith.constant 0.000000e+00 : f32
    %117 = vector.broadcast %cst_39 : f32 to vector<16x128xf32>
    %118 = arith.select %114, %116, %117 : vector<16x128xi1>, vector<16x128xf32>
    %119 = arith.mulf %118, %118 : vector<16x128xf32>
    %cst_40 = arith.constant dense<0.000000e+00> : vector<16xf32>
    %120 = vector.multi_reduction <add>, %119, %cst_40 [1] : vector<16x128xf32> to vector<16xf32>
    %121 = vector.shape_cast %120 : vector<16xf32> to vector<16x1xf32>
    %cst_41 = arith.constant 1.562500e-02 : f32
    %122 = vector.broadcast %cst_41 : f32 to vector<16x1xf32>
    %123 = arith.mulf %121, %122 : vector<16x1xf32>
    %cst_42 = arith.constant 9.99999974E-6 : f32
    %124 = vector.broadcast %cst_42 : f32 to vector<16x1xf32>
    %125 = arith.addf %123, %124 : vector<16x1xf32>
    %126 = math.rsqrt %125 : vector<16x1xf32>
    %127 = vector.broadcast %126 : vector<16x1xf32> to vector<16x128xf32>
    %128 = arith.mulf %118, %127 : vector<16x128xf32>
    %c0_43 = arith.constant 0 : index
    %c0_44 = arith.constant 0 : index
    %c0_45 = arith.constant 0 : index
    %129 = vector.load %arg7[%c0_43, %c0_44, %c0_45] : memref<3x1x128xf32, #tpu.memory_space<vmem>>, vector<1x1x128xf32>
    %130 = vector.shape_cast %129 : vector<1x1x128xf32> to vector<1x128xf32>
    %131 = vector.broadcast %130 : vector<1x128xf32> to vector<16x128xf32>
    %132 = arith.mulf %128, %131 : vector<16x128xf32>
    %c0_46 = arith.constant 0 : index
    %c0_47 = arith.constant 0 : index
    %c0_48 = arith.constant 0 : index
    %133 = vector.load %arg8[%c0_46, %c0_47, %c0_48] : memref<3x1x128xf32, #tpu.memory_space<vmem>>, vector<1x1x128xf32>
    %134 = vector.shape_cast %133 : vector<1x1x128xf32> to vector<1x128xf32>
    %135 = vector.broadcast %134 : vector<1x128xf32> to vector<16x128xf32>
    %136 = arith.addf %132, %135 : vector<16x128xf32>
    %c1 = arith.constant 1 : index
    %c0_49 = arith.constant 0 : index
    %c0_50 = arith.constant 0 : index
    %137 = vector.load %arg3[%c1, %c0_49, %c0_50] : memref<3x128x128xf32, #tpu.memory_space<vmem>>, vector<1x128x128xf32>
    %138 = vector.shape_cast %137 : vector<1x128x128xf32> to vector<128x128xf32>
    %cst_51 = arith.constant dense<0.000000e+00> : vector<16x128xf32>
    %139 = tpu.matmul %136, %138, %cst_51 {dimension_numbers = #tpu.dot_dimension_numbers<[1], [0], [0], [1], [0, 0, 1, 1], [], []>} : vector<16x128xf32>, vector<128x128xf32>, vector<16x128xf32> -> vector<16x128xf32>
    %c1_52 = arith.constant 1 : index
    %c0_53 = arith.constant 0 : index
    %c0_54 = arith.constant 0 : index
    %140 = vector.load %arg4[%c1_52, %c0_53, %c0_54] : memref<3x1x128xf32, #tpu.memory_space<vmem>>, vector<1x1x128xf32>
    %141 = vector.shape_cast %140 : vector<1x1x128xf32> to vector<1x128xf32>
    %142 = vector.broadcast %141 : vector<1x128xf32> to vector<16x128xf32>
    %143 = arith.addf %139, %142 : vector<16x128xf32>
    %c1_55 = arith.constant 1 : index
    %c0_56 = arith.constant 0 : index
    %c0_57 = arith.constant 0 : index
    %144 = vector.load %arg5[%c1_55, %c0_56, %c0_57] : memref<3x128x128xf32, #tpu.memory_space<vmem>>, vector<1x128x128xf32>
    %145 = vector.shape_cast %144 : vector<1x128x128xf32> to vector<128x128xf32>
    %cst_58 = arith.constant dense<0.000000e+00> : vector<16x128xf32>
    %146 = tpu.matmul %143, %145, %cst_58 {dimension_numbers = #tpu.dot_dimension_numbers<[1], [0], [0], [1], [0, 0, 1, 1], [], []>} : vector<16x128xf32>, vector<128x128xf32>, vector<16x128xf32> -> vector<16x128xf32>
    %c1_59 = arith.constant 1 : index
    %c0_60 = arith.constant 0 : index
    %c0_61 = arith.constant 0 : index
    %147 = vector.load %arg6[%c1_59, %c0_60, %c0_61] : memref<3x1x128xf32, #tpu.memory_space<vmem>>, vector<1x1x128xf32>
    %148 = vector.shape_cast %147 : vector<1x1x128xf32> to vector<1x128xf32>
    %149 = vector.broadcast %148 : vector<1x128xf32> to vector<16x128xf32>
    %150 = arith.addf %146, %149 : vector<16x128xf32>
    %151 = tpu.iota {dimensions = array<i32: 1>} : vector<16x128xi32>
    %cst_62 = arith.constant dense<0.000000e+00> : vector<16xf32>
    %152 = vector.multi_reduction <add>, %150, %cst_62 [1] : vector<16x128xf32> to vector<16xf32>
    %153 = vector.shape_cast %152 : vector<16xf32> to vector<16x1xf32>
    %cst_63 = arith.constant 1.562500e-02 : f32
    %154 = vector.broadcast %cst_63 : f32 to vector<16x1xf32>
    %155 = arith.mulf %153, %154 : vector<16x1xf32>
    %c64_i32_64 = arith.constant 64 : i32
    %156 = vector.broadcast %c64_i32_64 : i32 to vector<16x128xi32>
    %157 = arith.cmpi slt, %151, %156 : vector<16x128xi32>
    %158 = vector.broadcast %155 : vector<16x1xf32> to vector<16x128xf32>
    %159 = arith.subf %150, %158 : vector<16x128xf32>
    %cst_65 = arith.constant 0.000000e+00 : f32
    %160 = vector.broadcast %cst_65 : f32 to vector<16x128xf32>
    %161 = arith.select %157, %159, %160 : vector<16x128xi1>, vector<16x128xf32>
    %162 = arith.mulf %161, %161 : vector<16x128xf32>
    %cst_66 = arith.constant dense<0.000000e+00> : vector<16xf32>
    %163 = vector.multi_reduction <add>, %162, %cst_66 [1] : vector<16x128xf32> to vector<16xf32>
    %164 = vector.shape_cast %163 : vector<16xf32> to vector<16x1xf32>
    %cst_67 = arith.constant 1.562500e-02 : f32
    %165 = vector.broadcast %cst_67 : f32 to vector<16x1xf32>
    %166 = arith.mulf %164, %165 : vector<16x1xf32>
    %cst_68 = arith.constant 9.99999974E-6 : f32
    %167 = vector.broadcast %cst_68 : f32 to vector<16x1xf32>
    %168 = arith.addf %166, %167 : vector<16x1xf32>
    %169 = math.rsqrt %168 : vector<16x1xf32>
    %170 = vector.broadcast %169 : vector<16x1xf32> to vector<16x128xf32>
    %171 = arith.mulf %161, %170 : vector<16x128xf32>
    %c1_69 = arith.constant 1 : index
    %c0_70 = arith.constant 0 : index
    %c0_71 = arith.constant 0 : index
    %172 = vector.load %arg7[%c1_69, %c0_70, %c0_71] : memref<3x1x128xf32, #tpu.memory_space<vmem>>, vector<1x1x128xf32>
    %173 = vector.shape_cast %172 : vector<1x1x128xf32> to vector<1x128xf32>
    %174 = vector.broadcast %173 : vector<1x128xf32> to vector<16x128xf32>
    %175 = arith.mulf %171, %174 : vector<16x128xf32>
    %c1_72 = arith.constant 1 : index
    %c0_73 = arith.constant 0 : index
    %c0_74 = arith.constant 0 : index
    %176 = vector.load %arg8[%c1_72, %c0_73, %c0_74] : memref<3x1x128xf32, #tpu.memory_space<vmem>>, vector<1x1x128xf32>
    %177 = vector.shape_cast %176 : vector<1x1x128xf32> to vector<1x128xf32>
    %178 = vector.broadcast %177 : vector<1x128xf32> to vector<16x128xf32>
    %179 = arith.addf %175, %178 : vector<16x128xf32>
    %c2 = arith.constant 2 : index
    %c0_75 = arith.constant 0 : index
    %c0_76 = arith.constant 0 : index
    %180 = vector.load %arg3[%c2, %c0_75, %c0_76] : memref<3x128x128xf32, #tpu.memory_space<vmem>>, vector<1x128x128xf32>
    %181 = vector.shape_cast %180 : vector<1x128x128xf32> to vector<128x128xf32>
    %cst_77 = arith.constant dense<0.000000e+00> : vector<16x128xf32>
    %182 = tpu.matmul %179, %181, %cst_77 {dimension_numbers = #tpu.dot_dimension_numbers<[1], [0], [0], [1], [0, 0, 1, 1], [], []>} : vector<16x128xf32>, vector<128x128xf32>, vector<16x128xf32> -> vector<16x128xf32>
    %c2_78 = arith.constant 2 : index
    %c0_79 = arith.constant 0 : index
    %c0_80 = arith.constant 0 : index
    %183 = vector.load %arg4[%c2_78, %c0_79, %c0_80] : memref<3x1x128xf32, #tpu.memory_space<vmem>>, vector<1x1x128xf32>
    %184 = vector.shape_cast %183 : vector<1x1x128xf32> to vector<1x128xf32>
    %185 = vector.broadcast %184 : vector<1x128xf32> to vector<16x128xf32>
    %186 = arith.addf %182, %185 : vector<16x128xf32>
    %c2_81 = arith.constant 2 : index
    %c0_82 = arith.constant 0 : index
    %c0_83 = arith.constant 0 : index
    %187 = vector.load %arg5[%c2_81, %c0_82, %c0_83] : memref<3x128x128xf32, #tpu.memory_space<vmem>>, vector<1x128x128xf32>
    %188 = vector.shape_cast %187 : vector<1x128x128xf32> to vector<128x128xf32>
    %cst_84 = arith.constant dense<0.000000e+00> : vector<16x128xf32>
    %189 = tpu.matmul %186, %188, %cst_84 {dimension_numbers = #tpu.dot_dimension_numbers<[1], [0], [0], [1], [0, 0, 1, 1], [], []>} : vector<16x128xf32>, vector<128x128xf32>, vector<16x128xf32> -> vector<16x128xf32>
    %c2_85 = arith.constant 2 : index
    %c0_86 = arith.constant 0 : index
    %c0_87 = arith.constant 0 : index
    %190 = vector.load %arg6[%c2_85, %c0_86, %c0_87] : memref<3x1x128xf32, #tpu.memory_space<vmem>>, vector<1x1x128xf32>
    %191 = vector.shape_cast %190 : vector<1x1x128xf32> to vector<1x128xf32>
    %192 = vector.broadcast %191 : vector<1x128xf32> to vector<16x128xf32>
    %193 = arith.addf %189, %192 : vector<16x128xf32>
    %194 = tpu.iota {dimensions = array<i32: 1>} : vector<16x128xi32>
    %cst_88 = arith.constant dense<0.000000e+00> : vector<16xf32>
    %195 = vector.multi_reduction <add>, %193, %cst_88 [1] : vector<16x128xf32> to vector<16xf32>
    %196 = vector.shape_cast %195 : vector<16xf32> to vector<16x1xf32>
    %cst_89 = arith.constant 3.125000e-02 : f32
    %197 = vector.broadcast %cst_89 : f32 to vector<16x1xf32>
    %198 = arith.mulf %196, %197 : vector<16x1xf32>
    %c32_i32 = arith.constant 32 : i32
    %199 = vector.broadcast %c32_i32 : i32 to vector<16x128xi32>
    %200 = arith.cmpi slt, %194, %199 : vector<16x128xi32>
    %201 = vector.broadcast %198 : vector<16x1xf32> to vector<16x128xf32>
    %202 = arith.subf %193, %201 : vector<16x128xf32>
    %cst_90 = arith.constant 0.000000e+00 : f32
    %203 = vector.broadcast %cst_90 : f32 to vector<16x128xf32>
    %204 = arith.select %200, %202, %203 : vector<16x128xi1>, vector<16x128xf32>
    %205 = arith.mulf %204, %204 : vector<16x128xf32>
    %cst_91 = arith.constant dense<0.000000e+00> : vector<16xf32>
    %206 = vector.multi_reduction <add>, %205, %cst_91 [1] : vector<16x128xf32> to vector<16xf32>
    %207 = vector.shape_cast %206 : vector<16xf32> to vector<16x1xf32>
    %cst_92 = arith.constant 3.125000e-02 : f32
    %208 = vector.broadcast %cst_92 : f32 to vector<16x1xf32>
    %209 = arith.mulf %207, %208 : vector<16x1xf32>
    %cst_93 = arith.constant 9.99999974E-6 : f32
    %210 = vector.broadcast %cst_93 : f32 to vector<16x1xf32>
    %211 = arith.addf %209, %210 : vector<16x1xf32>
    %212 = math.rsqrt %211 : vector<16x1xf32>
    %213 = vector.broadcast %212 : vector<16x1xf32> to vector<16x128xf32>
    %214 = arith.mulf %204, %213 : vector<16x128xf32>
    %c2_94 = arith.constant 2 : index
    %c0_95 = arith.constant 0 : index
    %c0_96 = arith.constant 0 : index
    %215 = vector.load %arg7[%c2_94, %c0_95, %c0_96] : memref<3x1x128xf32, #tpu.memory_space<vmem>>, vector<1x1x128xf32>
    %216 = vector.shape_cast %215 : vector<1x1x128xf32> to vector<1x128xf32>
    %217 = vector.broadcast %216 : vector<1x128xf32> to vector<16x128xf32>
    %218 = arith.mulf %214, %217 : vector<16x128xf32>
    %c2_97 = arith.constant 2 : index
    %c0_98 = arith.constant 0 : index
    %c0_99 = arith.constant 0 : index
    %219 = vector.load %arg8[%c2_97, %c0_98, %c0_99] : memref<3x1x128xf32, #tpu.memory_space<vmem>>, vector<1x1x128xf32>
    %220 = vector.shape_cast %219 : vector<1x1x128xf32> to vector<1x128xf32>
    %221 = vector.broadcast %220 : vector<1x128xf32> to vector<16x128xf32>
    %222 = arith.addf %218, %221 : vector<16x128xf32>
    %c0_100 = arith.constant 0 : index
    %c0_101 = arith.constant 0 : index
    %223 = vector.load %arg9[%c0_100, %c0_101] : memref<16x128xf32, #tpu.memory_space<vmem>>, vector<16x128xf32>
    tpu.vector_store %arg9[%c0_100, %c0_101], %222 {strides = array<i32>} : memref<16x128xf32, #tpu.memory_space<vmem>>, vector<16x128xf32>,
    return
  }
  func.func @transform_0(%arg0: i32) -> (i32, i32) {
    %c0_i32 = arith.constant 0 : i32
    %c0_i32_0 = arith.constant 0 : i32
    return %arg0, %c0_i32 : i32, i32
  }
  func.func @transform_1(%arg0: i32) -> (i32, i32, i32) {
    %c0_i32 = arith.constant 0 : i32
    %c0_i32_0 = arith.constant 0 : i32
    %c0_i32_1 = arith.constant 0 : i32
    %c0_i32_2 = arith.constant 0 : i32
    return %c0_i32, %c0_i32_0, %c0_i32_1 : i32, i32, i32
  }
  func.func @transform_2(%arg0: i32) -> (i32, i32, i32) {
    %c0_i32 = arith.constant 0 : i32
    %c0_i32_0 = arith.constant 0 : i32
    %c0_i32_1 = arith.constant 0 : i32
    %c0_i32_2 = arith.constant 0 : i32
    return %c0_i32, %c0_i32_0, %c0_i32_1 : i32, i32, i32
  }
  func.func @transform_3(%arg0: i32) -> (i32, i32, i32) {
    %c0_i32 = arith.constant 0 : i32
    %c0_i32_0 = arith.constant 0 : i32
    %c0_i32_1 = arith.constant 0 : i32
    %c0_i32_2 = arith.constant 0 : i32
    return %c0_i32, %c0_i32_0, %c0_i32_1 : i32, i32, i32
  }
  func.func @transform_4(%arg0: i32) -> (i32, i32, i32) {
    %c0_i32 = arith.constant 0 : i32
    %c0_i32_0 = arith.constant 0 : i32
    %c0_i32_1 = arith.constant 0 : i32
    %c0_i32_2 = arith.constant 0 : i32
    return %c0_i32, %c0_i32_0, %c0_i32_1 : i32, i32, i32
  }
  func.func @transform_5(%arg0: i32) -> (i32, i32, i32) {
    %c0_i32 = arith.constant 0 : i32
    %c0_i32_0 = arith.constant 0 : i32
    %c0_i32_1 = arith.constant 0 : i32
    %c0_i32_2 = arith.constant 0 : i32
    return %c0_i32, %c0_i32_0, %c0_i32_1 : i32, i32, i32
  }
  func.func @transform_6(%arg0: i32) -> (i32, i32, i32) {
    %c0_i32 = arith.constant 0 : i32
    %c0_i32_0 = arith.constant 0 : i32
    %c0_i32_1 = arith.constant 0 : i32
    %c0_i32_2 = arith.constant 0 : i32
    return %c0_i32, %c0_i32_0, %c0_i32_1 : i32, i32, i32
  }
  func.func @transform_7(%arg0: i32) -> (i32, i32, i32) {
    %c0_i32 = arith.constant 0 : i32
    %c0_i32_0 = arith.constant 0 : i32
    %c0_i32_1 = arith.constant 0 : i32
    %c0_i32_2 = arith.constant 0 : i32
    return %c0_i32, %c0_i32_0, %c0_i32_1 : i32, i32, i32
  }
  func.func @transform_8(%arg0: i32) -> (i32, i32) {
    %c0_i32 = arith.constant 0 : i32
    %c0_i32_0 = arith.constant 0 : i32
    return %arg0, %c0_i32 : i32, i32
  }
  func.func @transform_9(%arg0: i32) -> (i32, i32) {
    %c0_i32 = arith.constant 0 : i32
    %c0_i32_0 = arith.constant 0 : i32
    return %arg0, %c0_i32 : i32, i32
  }
}

</mosaic_0001>

<bundles_post_ra>
// kernel: tpu_custom_call.1
= control target key start
LH: loop header
LB: loop body
LE: loop exit
PB: predicated region body
PF: predicated region fallthrough
CT: control target
= control target key end

     0   :  { %s2649_s0 = inlined_call_operand.hbm [shape: f32[32,128], index: 0, kind: input, shape index: {}]   ;;  %s2650_s1 = inlined_call_operand.hbm [shape: f32[8,1,128], index: 1, kind: input, shape index: {}]   ;;  %s2651_s2 = inlined_call_operand.hbm [shape: f32[3,128,128], index: 2, kind: input, shape index: {}]   ;;  %s2652_s3 = inlined_call_operand.vmem [shape: f32[3,1,128], index: 3, kind: input, shape index: {}]   ;;  %s2653_s4 = inlined_call_operand.hbm [shape: f32[3,128,128], index: 4, kind: input, shape index: {}]   ;;  %s2654_s5 = inlined_call_operand.vmem [shape: f32[3,1,128], index: 5, kind: input, shape index: {}]   ;;  %s2655_s6 = inlined_call_operand.vmem [shape: f32[3,1,128], index: 6, kind: input, shape index: {}]   ;;  %s2656_s7 = inlined_call_operand.vmem [shape: f32[3,1,128], index: 7, kind: input, shape index: {}]   ;;  %s2657_s8 = inlined_call_operand.hbm [shape: f32[32,128], index: 8, kind: output, shape index: {0}]   ;;  %s2658_s9 = inlined_call_operand.hbm [shape: f32[32,128], index: 9, kind: output, shape index: {1}]  }
   0x1   :  { %2665 = sst [smem:[#allocation18_spill]] %s2650_s1 }
   0x2   :  { %2666 = sst [smem:[#allocation19_spill]] %s2651_s2 }
   0x3   :  { %2667 = sst [smem:[#allocation20_spill]] %s2653_s4 }
   0x4   :  { %15 = vsyncpa [#allocation3], 0 }
   0x5   :  { %17 = vsyncpa [#allocation3 + $0x1], 0 }
   0x6   :  { %18 = vsyncpa [#allocation6], 0 }
   0x7   :  { %19 = vsyncpa [#allocation9], 0 }
   0x8   :  { %20 = vsyncpa [#allocation4], 0 }
   0x9   :  { %22 = vsyncpa [#allocation4 + $0x1], 0 }
   0xa   :  { %23 = vsyncpa [#allocation12], 0 }
   0xb   :  { %25 = vsyncpa [#allocation12 + $0x1], 0  ;;  %s2235_s30 = smov 0   ;;  %s2237_s10 = smov 0  }
   0xc   :  { %s2239_s11 = smov 0   ;;  %s2241_s12 = smov 0  }
   0xd LB: > { %s2256_s13 = sadd.s32 4294967295, %s2171_s12   ;;  %s1490_s14 = sadd.s32 4294967294, %s2171_s12   ;;  %s2171_s12 = sphi %s2241_s12, %s2692_s12   ;;  %s2167_s11 = sphi %s2239_s11, %s2691_s11   ;;  %s2163_s10 = sphi %s2237_s10, %s2690_s10   ;;  %s2159_s30 = sphi %s2235_s30, %s2689_s30  }
   0xe   : > { %p51_p0 = scmp.ne.s32.totalorder %s2163_s10, %s2159_s30  ;;  %p2659_p1 = scmp.eq.s32.totalorder %s2256_s13, 0 }
   0xf   : > { %p228_p3 = scmp.eq.s32.totalorder %s1490_s14, 1  ;;  %p1491_p5 = scmp.ge.s32.totalorder %s2171_s12, 1 }
  0x10   : > { %p2265_p4 = por %p2659_p1, %p51_p0  ;;  %p261_p7 = scmp.lt.s32.totalorder %s2171_s12, 3 }
  0x11   : > { %p2270_p6 = por %p228_p3, %p51_p0  ;;  %s2173_s18 = smov [#allocation5]  }
  0x12   : > { %s2668_s15 = scalar_select %p2265_p4, 1, 0 }
  0x13   : > { %s2669_s16 = scalar_select %p2270_p6, 1, 0 }
  0x14   : > { %p2275_p8 = pnand %p1491_p5, %p261_p7  ;;  %s273_s19 = sshll.u32 %s2173_s18, 4  ;;  %s274_s19 = int_to_ptr.vmem [resolvable:$true] %s273_s19 }
  0x15   : > { %s2174_s21 = smov [#allocation7]   ;;  %s1974_s23 = scalar_lea.vmem %s274_s19, 128 }
  0x16   : > { %s2670_s17 = scalar_select %p2275_p8, 1, 0 }
  0x17   : > { %p1881_p9 = pneg %p2275_p8  ;;  %s286_s22 = sshll.u32 %s2174_s21, 4  ;;  %s287_s22 = int_to_ptr.vmem [resolvable:$true] %s286_s22 }
  0x18   : > { %p1975_p13 = scmp.ne.s32.totalorder %s274_s19, %s1974_s23  ;;  %p1982_p5 = scmp.lt.s32.totalorder %s274_s19, %s274_s19 }
  0x19   : > { %p2284_p11 = pnand %p1881_p9, %p2659_p1  ;;  %p1983_p7 = scmp.lt.s32.totalorder %s1974_s23, %s1974_s23 }
  0x1b   : > { %p1965_p12 = pneg %p2284_p11  ;;  %p1984_p10 = por %p1983_p7, %p1982_p5 }
  0x1d   : > { %p1977_p0 = pnand %p1975_p13, %p1965_p12 }
  0x1f   : > { %p1978_p3 = pneg %p1977_p0 }
  0x21   : > { %p1985_p9 = pnand %p1984_p10, %p1978_p3 }
  0x23   : > { %1988 = shalt.err (!%p1985_p9)
}
  0x24   : > { %s2175_s24 = smov 16   ;;  %s2176_s25 = smov 1  }
  0x25   : > { %s2672_s1 = sld [smem:[#allocation18_spill]]  ;;  %s2000_s28 = scalar_lea.vmem %s287_s22, 6144 }
  0x26   : > { %p2001_p1 = scmp.ne.s32.totalorder %s287_s22, %s2000_s28  ;;  %p2008_p2 = scmp.lt.s32.totalorder %s287_s22, %s287_s22 }
  0x27   : > { %p2009_p6 = scmp.lt.s32.totalorder %s2000_s28, %s2000_s28 }
  0x28   : > { %p2003_p13 = pnand %p2001_p1, %p1965_p12 }
  0x29   : > { %p2010_p5 = por %p2009_p6, %p2008_p2 }
  0x2a   : > { %p2004_p0 = pneg %p2003_p13 }
  0x2b   : > { %1884 = dma.hbm_to_vmem [thread:$0]  (!%p2284_p11), %s2672_s1, 128, %s274_s19, [#allocation6], %s2175_s24, %s2175_s24, %s2176_s25  }
  0x2c   : > { %p2011_p10 = pnand %p2010_p5, %p2004_p0 }
  0x2e   : > { %2014 = shalt.err (!%p2011_p10)
}
  0x2f   : > { %s2660_s29 = smov 128   ;;  %s2661_s14 = smov 8  }
  0x30   : > { %s2673_s2 = sld [smem:[#allocation19_spill]]  ;;  %s2179_s21 = smov [#allocation8]  }
  0x31   : > { %s302_s23 = sshll.u32 %s2179_s21, 4  ;;  %s2310_s24 = sadd.s32 1, %s2171_s12   ;;  %s303_s23 = int_to_ptr.vmem [resolvable:$true] %s302_s23 }
  0x32   : > { %s2026_s25 = scalar_lea.vmem %s303_s23, 6144  ;;  %p2034_p3 = scmp.lt.s32.totalorder %s303_s23, %s303_s23 }
  0x33   : > { %p2027_p1 = scmp.ne.s32.totalorder %s303_s23, %s2026_s25  ;;  %p2035_p7 = scmp.lt.s32.totalorder %s2026_s25, %s2026_s25 }
  0x35   : > { %p2029_p2 = pnand %p2027_p1, %p1965_p12  ;;  %p2036_p9 = por %p2035_p7, %p2034_p3 }
  0x36   : > { %1887 = dma.hbm_to_vmem [thread:$0]  (!%p2284_p11), %s2673_s2, 6144, %s287_s22, [#allocation6], %s2660_s29, %s2660_s29, %s2661_s14  }
  0x37   : > { %p2030_p6 = pneg %p2029_p2 }
  0x39   : > { %p2037_p13 = pnand %p2036_p9, %p2030_p6 }
  0x3b   : > { %2040 = shalt.err (!%p2037_p13)
}
  0x3c   : > { %s2674_s4 = sld [smem:[#allocation20_spill]]  ;;  %s35_s27 = ssub.s32 %s2171_s12, %s2310_s24 }
  0x3d   : > { %s38_s20 = sadd.s32 1, %s2167_s11  ;;  %p36_p12 = scmp.eq.s32.totalorder %s35_s27, 0 }
  0x3e   : > { %p45_p0 = scmp.ne.s32.totalorder %s2167_s11, %s2163_s10  ;;  %p46_p5 = scmp.eq.s32.totalorder %s2171_s12, 0 }
  0x3f   : > { %p1905_p10 = scmp.lt.s32.totalorder %s2171_s12, 2  ;;  %p2675_p2 = scmp.eq.s32.totalorder %s2256_s13, 1 }
  0x40   : > { %s2331_s28 = scalar_select %p36_p12, %s2167_s11, %s38_s20  }
  0x41   : > { %p47_p1 = por %p46_p5, %p45_p0  ;;  %p2335_p6 = por %p2675_p2, %p45_p0 }
  0x42   : > { %1890 = dma.hbm_to_vmem [thread:$0]  (!%p2284_p11), %s2674_s4, 6144, %s303_s23, [#allocation9], %s2660_s29, %s2660_s29, %s2661_s14  }
  0x43   : > { %s2676_s18 = scalar_select %p2335_p6, 1, 0 }
  0x44   : > { %s325_s19 = sand.u32 1, %s2167_s11   ;;  %s1542_s21 = sshll.u32 %s2171_s12, 8 }
  0x45   : > { %s1496_s25 = sshll.u32 %s325_s19, 4  ;;  %s2344_s23 = scalar_lea.hbm %s2649_s0, %s1542_s21 }
  0x46   : > { %s329_s27 = scalar_lea.vmem [#allocation2], %s1496_s25  ;;  %p2346_p11 = pnand %p1905_p10, %p47_p1 }
  0x47   : > { %s336_s20 = sshll.u32 %s329_s27, 4  ;;  %s2352_s14 = scalar_lea.sflag [#allocation3], %s325_s19  ;;  %s2350_s20 = int_to_ptr.vmem [resolvable:$true] %s336_s20 }
  0x48   : > { %s2041_s1 = scalar_lea.hbm %s2344_s23, 256  ;;  %p2043_p7 = pneg %p2346_p11 }
  0x49   : > { %p2042_p3 = scmp.ne.s32.totalorder %s2344_s23, %s2041_s1  ;;  %s2046_s25 = scalar_lea.hbm %s2649_s0, 512 }
  0x4a   : > { %p2047_p12 = scmp.lt.s32.totalorder %s2344_s23, %s2649_s0  ;;  %p2048_p0 = scmp.lt.s32.totalorder %s2046_s25, %s2041_s1 }
  0x4b   : > { %p2044_p9 = pnand %p2043_p7, %p2042_p3 }
  0x4c   : > { %p2049_p5 = por %p2048_p0, %p2047_p12 }
  0x4d   : > { %p2045_p13 = pneg %p2044_p9 }
  0x4f   : > { %p2050_p10 = pnand %p2049_p5, %p2045_p13 }
  0x51   : > { %2053 = shalt.err (!%p2050_p10)
}
  0x52   : > { %s2054_s19 = scalar_lea.vmem %s2350_s20, 256  ;;  %s2180_s2 = smov [#allocation2]  }
  0x53   : > { %p2055_p1 = scmp.ne.s32.totalorder %s2350_s20, %s2054_s19  ;;  %s2059_s4 = sshll.u32 %s2180_s2, 4  ;;  %s2060_s4 = int_to_ptr.vmem [resolvable:$false] %s2059_s4 }
  0x54   : > { %s2061_s21 = scalar_lea.vmem %s2060_s4, 512  ;;  %p2062_p9 = scmp.lt.s32.totalorder %s2350_s20, %s2060_s4 }
  0x55   : > { %p2057_p2 = pnand %p2055_p1, %p2043_p7  ;;  %p2063_p6 = scmp.lt.s32.totalorder %s2061_s21, %s2054_s19 }
  0x57   : > { %p2058_p3 = pneg %p2057_p2  ;;  %p2064_p4 = por %p2063_p6, %p2062_p9 }
  0x59   : > { %p2065_p8 = pnand %p2064_p4, %p2058_p3 }
  0x5b   : > { %2068 = shalt.err (!%p2065_p8)
}
  0x5c   : > { %s2678_s1 = smov 8   ;;  %s2679_s22 = smov 128  }
  0x5d   : > { %1894 = dma.hbm_to_vmem [thread:$0]  (!%p2346_p11), %s2344_s23, 256, %s2350_s20, %s2352_s14, %s2679_s22, %s2679_s22, %s2678_s1  }
  0x5e   : > { %p2680_p7 = scmp.ne.s32.totalorder %s2670_s17, 0 }
  0x5f   : > { %s2379_s2 = sand.u32 (!%p2680_p7), 1, %s2163_s10   ;;  %p2681_p4 = scmp.ne.s32.totalorder (!%p2680_p7), %s2668_s15, 0 }
  0x60   : > { %348 = sbr.rel (%p2680_p7) target bundleno = 2266 (0x8da), region = 52  ;;  %s2382_s4 = sshll.u32 (!%p2680_p7), %s2379_s2, 4 }
  0x61   : > { %s351_s29 = scalar_lea.sflag (!%p2680_p7), [#allocation3], %s2379_s2  ;;  %s354_s25 = scalar_lea.vmem (!%p2680_p7), [#allocation2], %s2382_s4 }
  0x65   : > { %2138 = dma.done.wait (%p2681_p4), %s351_s29, 256  }
  0x66   : > { %2140 = vsyncadd (%p2681_p4), %s351_s29, 4294967040  ;;  %p2682_p8 = scmp.eq.s32.totalorder %s2256_s13, 0 }
  0x68   : > { %2142 = dma.done.wait (%p2682_p8), [#allocation6], 6272   ;;  %p2683_p6 = pmov %p2682_p8 }
  0x6a   : > { %2144 = vsyncadd (%p2683_p6), [#allocation6], 4294961024  ;;  %p2684_p11 = pmov %p2683_p6 }
  0x6b   : > { %p2685_p13 = pmov %p2683_p6 }
  0x6c   : > { %2146 = dma.done.wait (%p2684_p11), [#allocation9], 6144  }
  0x6d   : > { %2148 = vsyncadd (%p2685_p13), [#allocation9], 4294961152  ;;  %v461_v0 = vld [vmem:[#allocation7 + $0x78] sm:$0xff]  ;;  %v460_v1 = vld [vmem:[#allocation7 + $0x70] sm:$0xff]  ;;  %v411_v34 = vlaneseq  ;;  %s2490_s14 = scalar_lea.vmem [#allocation11], %s2382_s4  ;;  %s1543_s1 = sshll.u32 %s2256_s13, 8 }
  0x6e   : > { %1653 = vmatprep.subr.mxu0 %v461_v0  ;;  %v459_v2 = vld [vmem:[#allocation7 + $0x68] sm:$0xff]  ;;  %v458_v3 = vld [vmem:[#allocation7 + $0x60] sm:$0xff]  ;;  %v457_v5 = vld [vmem:[#allocation7 + $0x58] sm:$0xff]  ;;  %s1356_s15 = sshll.u32 %s2490_s14, 4  ;;  %s1327_s17 = scalar_lea.sflag [#allocation12], %s2379_s2  ;;  %s2563_s15 = int_to_ptr.vmem [resolvable:$true] %s1356_s15 }
  0x6f   : > { %1654 = vmatpush3.msra.mxu0 %v461_v0  ;;  %v409_v4 = vld [vmem:[%s354_s25] sm:$0xff]  ;;  %v701_v7 = vld [vmem:[#allocation8 + $0x70] sm:$0xff]  ;;  %v699_v11 = vld [vmem:[#allocation8 + $0x60] sm:$0xff]  ;;  %v2403_v35 = vshrl.u32 %v411_v34, 7  ;;  %s2069_s23 = scalar_lea.vmem %s2563_s15, 256  ;;  %p2686_p0 = scmp.ne.s32.totalorder %s2676_s18, 0 }
  0x70   : > { %1655 = vmatprep.subr.mxu0 %v460_v1  ;;  %1685 = vmatprep.mubr.f32.mxu0 %v409_v4  ;;  %v702_v6 = vld [vmem:[#allocation8 + $0x78] sm:$0xff]  ;;  %v456_v8 = vld [vmem:[#allocation7 + $0x50] sm:$0xff]  ;;  %v700_v9 = vld [vmem:[#allocation8 + $0x68] sm:$0xff]  ;;  %p2070_p12 = scmp.ne.s32.totalorder %s2563_s15, %s2069_s23  ;;  %s2181_s20 = smov [#allocation11]  }
  0x71   : > { %1656 = vmatpush3.msra.mxu0 %v460_v1  ;;  %1688 = vmatprep.subr.mxu1 %v702_v6  ;;  %v455_v10 = vld [vmem:[#allocation7 + $0x48] sm:$0xff]  ;;  %v454_v12 = vld [vmem:[#allocation7 + $0x40] sm:$0xff]  ;;  %v698_v13 = vld [vmem:[#allocation8 + $0x58] sm:$0xff]  ;;  %v2406_v36 = vand.u32 15, %v2403_v35  ;;  %vm554_vm0 = vcmp.lt.s32.totalorder %v2403_v35, 1  ;;  %vm573_vm2 = vcmp.lt.s32.totalorder %v2403_v35, 2 }
  0x72   : > { %1657 = vmatprep.subr.mxu0 %v459_v2  ;;  %1689 = vmatpush3.msra.mxu1 %v702_v6  ;;  %v453_v14 = vld [vmem:[#allocation7 + $0x38] sm:$0xff]  ;;  %v697_v15 = vld [vmem:[#allocation8 + $0x50] sm:$0xff]  ;;  %v696_v17 = vld [vmem:[#allocation8 + $0x48] sm:$0xff]  ;;  %vm592_vm4 = vcmp.lt.s32.totalorder %v2403_v35, 3  ;;  %vm611_vm6 = vcmp.lt.s32.totalorder %v2403_v35, 4  ;;  %vm630_vm8 = vcmp.lt.s32.totalorder %v2403_v35, 5  ;;  %p2071_p5 = pnand %p2070_p12, %p2686_p0 }
  0x73   : > { %1658 = vmatpush3.msra.mxu0 %v459_v2  ;;  %1690 = vmatprep.subr.mxu1 %v701_v7  ;;  %v452_v16 = vld [vmem:[#allocation7 + $0x30] sm:$0xff]  ;;  %v451_v18 = vld [vmem:[#allocation7 + $0x28] sm:$0xff]  ;;  %v695_v19 = vld [vmem:[#allocation8 + $0x40] sm:$0xff]  ;;  %vm557_vm1 = vcmp.ge.s32.totalorder %v2406_v36, 1  ;;  %vm576_vm3 = vcmp.ge.s32.totalorder %v2406_v36, 2  ;;  %vm595_vm5 = vcmp.ge.s32.totalorder %v2406_v36, 3 }
  0x74   : > { %1659 = vmatprep.subr.mxu0 %v458_v3  ;;  %1691 = vmatpush3.msra.mxu1 %v701_v7  ;;  %v450_v20 = vld [vmem:[#allocation7 + $0x20] sm:$0xff]  ;;  %v694_v21 = vld [vmem:[#allocation8 + $0x38] sm:$0xff]  ;;  %v693_v23 = vld [vmem:[#allocation8 + $0x30] sm:$0xff]  ;;  %vm614_vm7 = vcmp.ge.s32.totalorder %v2406_v36, 4  ;;  %vm649_vm9 = vcmp.lt.s32.totalorder %v2403_v35, 6  ;;  %vm633_vm10 = vcmp.ge.s32.totalorder %v2406_v36, 5  ;;  %p2072_p10 = pneg %p2071_p5 }
  0x75   : > { %1660 = vmatpush3.msra.mxu0 %v458_v3  ;;  %1692 = vmatprep.subr.mxu1 %v700_v9  ;;  %v449_v22 = vld [vmem:[#allocation7 + $0x18] sm:$0xff]  ;;  %v448_v24 = vld [vmem:[#allocation7 + $0x10] sm:$0xff]  ;;  %v692_v25 = vld [vmem:[#allocation8 + $0x28] sm:$0xff]  ;;  %vm652_vm11 = vcmp.ge.s32.totalorder %v2406_v36, 6  ;;  %vm668_vm12 = vcmp.lt.s32.totalorder %v2403_v35, 7  ;;  %vm671_vm13 = vcmp.ge.s32.totalorder %v2406_v36, 7 }
  0x76   : > { %1661 = vmatprep.subr.mxu0 %v457_v5  ;;  %1693 = vmatpush3.msra.mxu1 %v700_v9  ;;  %v447_v26 = vld [vmem:[#allocation7 + $0x8] sm:$0xff]  ;;  %v691_v27 = vld [vmem:[#allocation8 + $0x20] sm:$0xff]  ;;  %v690_v29 = vld [vmem:[#allocation8 + $0x18] sm:$0xff]  ;;  %s2073_s26 = sshll.u32 %s2181_s20, 4  ;;  %s2074_s26 = int_to_ptr.vmem [resolvable:$false] %s2073_s26 }
  0x77   : > { %1662 = vmatpush3.msra.mxu0 %v457_v5  ;;  %1694 = vmatprep.subr.mxu1 %v699_v11  ;;  %v446_v28 = vld [vmem:[#allocation7] sm:$0xff]  ;;  %v689_v31 = vld [vmem:[#allocation8 + $0x10] sm:$0xff]  ;;  %v688_v32 = vld [vmem:[#allocation8 + $0x8] sm:$0xff]  ;;  %s2075_s27 = scalar_lea.vmem %s2074_s26, 512  ;;  %p2076_p1 = scmp.lt.s32.totalorder %s2563_s15, %s2074_s26 }
  0x78   : > { %1663 = vmatprep.subr.mxu0 %v456_v8  ;;  %1695 = vmatpush3.msra.mxu1 %v699_v11  ;;  %v410_v30 = vld [vmem:[%s354_s25 + $0x8] sm:$0xff]  ;;  %v1506_v37 = vld [vmem:[%s2652_s3] ss:$0 sm:$0xff]  ;;  %v1507_v40 = vld [vmem:[#allocation5 + $0x7] ss:$0 sm:$0xff]  ;;  %s2560_s25 = scalar_lea.hbm %s2658_s9, %s1543_s1  ;;  %p2077_p2 = scmp.lt.s32.totalorder %s2075_s27, %s2069_s23 }
  0x79   : > { %1664 = vmatpush3.msra.mxu0 %v456_v8  ;;  %1696 = vmatprep.subr.mxu1 %v698_v13  ;;  %v687_v33 = vld [vmem:[#allocation8] sm:$0xff]  ;;  %v1508_v46 = vld [vmem:[#allocation5 + $0x6] ss:$0 sm:$0xff]  ;;  %v1509_v55 = vld [vmem:[#allocation5 + $0x5] ss:$0 sm:$0xff] }
  0x7a   : > { %1665 = vmatprep.subr.mxu0 %v455_v10  ;;  %1697 = vmatpush3.msra.mxu1 %v698_v13  ;;  %v1510_v0 = vld [vmem:[#allocation5 + $0x4] ss:$0 sm:$0xff]  ;;  %v1511_v9 = vld [vmem:[#allocation5 + $0x3] ss:$0 sm:$0xff]  ;;  %v1515_v36 = vld [vmem:[%s2654_s5] ss:$0 sm:$0xff]  ;;  %p2078_p3 = por %p2077_p2, %p2076_p1 }
  0x7b   : > { %1666 = vmatpush3.msra.mxu0 %v455_v10  ;;  %1698 = vmatprep.subr.mxu1 %v697_v15 }
  0x7c   : > { %1667 = vmatprep.subr.mxu0 %v454_v12  ;;  %1699 = vmatpush3.msra.mxu1 %v697_v15  ;;  %p2079_p9 = pnand %p2078_p3, %p2072_p10 }
  0x7d   : > { %1668 = vmatpush3.msra.mxu0 %v454_v12  ;;  %1700 = vmatprep.subr.mxu1 %v696_v17 }
  0x7e   : > { %1669 = vmatprep.subr.mxu0 %v453_v14  ;;  %1701 = vmatpush3.msra.mxu1 %v696_v17 }
  0x7f   : > { %1670 = vmatpush3.msra.mxu0 %v453_v14  ;;  %1702 = vmatprep.subr.mxu1 %v695_v19 }
  0x80   : > { %1671 = vmatprep.subr.mxu0 %v452_v16  ;;  %1703 = vmatpush3.msra.mxu1 %v695_v19 }
  0x81   : > { %1672 = vmatpush3.msra.mxu0 %v452_v16  ;;  %1704 = vmatprep.subr.mxu1 %v694_v21 }
  0x82   : > { %1673 = vmatprep.subr.mxu0 %v451_v18  ;;  %1705 = vmatpush3.msra.mxu1 %v694_v21 }
  0x83   : > { %1674 = vmatpush3.msra.mxu0 %v451_v18  ;;  %1706 = vmatprep.subr.mxu1 %v693_v23  ;;  %v1512_v18 = vld [vmem:[#allocation5 + $0x2] ss:$0 sm:$0xff] }
  0x84   : > { %1675 = vmatprep.subr.mxu0 %v450_v20  ;;  %1707 = vmatpush3.msra.mxu1 %v693_v23 }
  0x85   : > { %1676 = vmatpush3.msra.mxu0 %v450_v20  ;;  %1708 = vmatprep.subr.mxu1 %v692_v25 }
  0x86   : > { %1677 = vmatprep.subr.mxu0 %v449_v22  ;;  %1709 = vmatpush3.msra.mxu1 %v692_v25 }
  0x87   : > { %1678 = vmatpush3.msra.mxu0 %v449_v22  ;;  %1710 = vmatprep.subr.mxu1 %v691_v27 }
  0x88   : > { %1679 = vmatprep.subr.mxu0 %v448_v24  ;;  %1711 = vmatpush3.msra.mxu1 %v691_v27  ;;  %v1513_v27 = vld [vmem:[#allocation5 + $0x1] ss:$0 sm:$0xff] }
  0x89   : > { %1680 = vmatpush3.msra.mxu0 %v448_v24  ;;  %1712 = vmatprep.subr.mxu1 %v690_v29 }
  0x8a   : > { %1681 = vmatprep.subr.mxu0 %v447_v26  ;;  %1713 = vmatpush3.msra.mxu1 %v690_v29 }
  0x8b   : > { %1682 = vmatpush3.msra.mxu0 %v447_v26  ;;  %1714 = vmatprep.subr.mxu1 %v689_v31 }
  0x8c   : > { %1683 = vmatprep.subr.mxu0 %v446_v28  ;;  %1715 = vmatpush3.msra.mxu1 %v689_v31 }
  0x8d   : > { %1684 = vmatpush3.msra.mxu0 %v446_v28  ;;  %1716 = vmatprep.subr.mxu1 %v688_v32 }
  0x8e   : > { %1686 = vmatmul.mubr.f32.vlgmr.msra.gmra.mxu0 %v410_v30  ;;  %1717 = vmatpush3.msra.mxu1 %v688_v32 }
  0x8f   : > { %1718 = vmatprep.subr.mxu1 %v687_v33 }
  0x90   : > { %1719 = vmatpush3.msra.mxu1 %v687_v33 }
 0x14e   : > { %v1687_v38 = vpop.f32.mrf.mxu0 }
 0x14f   : > { %v2411_v39 = vadd.f32 %v1687_v38, %v1506_v37  ;;  %v1514_v38 = vld [vmem:[#allocation5] ss:$0 sm:$0xff] }
 0x150   : > { %v535_v41 = vpop.f32.mrf.mxu0 }
 0x151   : > { %v2420_v42 = vadd.f32 %v1506_v37, %v535_v41  ;;  %v551_v43 = vmul.f32 %v1507_v40, %v2411_v39  ;;  %v553_v44 = vrot.slane %v2411_v39, 7  ;;  %v572_v45 = vrot.slane %v2411_v39, 6 }
 0x152   : > { %v591_v50 = vrot.slane %v2411_v39, 5  ;;  %v610_v52 = vrot.slane %v2411_v39, 4  ;;  %v629_v53 = vrot.slane %v2411_v39, 3  ;;  %v648_v54 = vrot.slane %v2411_v39, 2 }
 0x153   : > { %1720 = vmatprep.mubr.f32.mxu1 %v2420_v42  ;;  %v552_v47 = vrot.slane %v2420_v42, 7  ;;  %v571_v48 = vrot.slane %v2420_v42, 6  ;;  %v590_v49 = vrot.slane %v2420_v42, 5  ;;  %v609_v51 = vrot.slane %v2420_v42, 4 }
 0x154   : > { %1721 = vmatmul.mubr.f32.vlgmr.msra.gmra.mxu1 %v2411_v39  ;;  %v628_v63 = vrot.slane %v2420_v42, 3  ;;  %v550_v1 = vmul.f32 %v1507_v40, %v2420_v42  ;;  %v647_v8 = vrot.slane %v2420_v42, 2  ;;  %v666_v22 = vrot.slane %v2420_v42, 1 }
 0x155   : > { %v555_v56 = vsel %vm554_vm0, %v552_v47, %v553_v44  ;;  %v556_v57 = vsel %vm554_vm0, %v553_v44, %v552_v47  ;;  %v574_v58 = vsel %vm573_vm2, %v571_v48, %v572_v45  ;;  %v575_v59 = vsel %vm573_vm2, %v572_v45, %v571_v48 }
 0x156   : > { %v559_v60 = vsel %vm557_vm1, %v556_v57, 0.0  ;;  %v568_v61 = vmul.f32 %v1508_v46, %v555_v56  ;;  %v578_v62 = vsel %vm576_vm3, %v575_v59, 0.0  ;;  %v593_v3 = vsel %vm592_vm4, %v590_v49, %v591_v50  ;;  %v846_v57 = vld [vmem:[#allocation7 + $0xf8] sm:$0xff] }
 0x157   : > { %v567_v2 = vmul.f32 %v1508_v46, %v559_v60  ;;  %v594_v4 = vsel %vm592_vm4, %v591_v50, %v590_v49  ;;  %v587_v6 = vmul.f32 %v1509_v55, %v574_v58  ;;  %v586_v11 = vmul.f32 %v1509_v55, %v578_v62  ;;  %v845_v58 = vld [vmem:[#allocation7 + $0xf0] sm:$0xff]  ;;  %1723 = vmatprep.subr.mxu0 %v846_v57 }
 0x158   : > { %v570_v5 = vadd.f32 %v568_v61, %v551_v43  ;;  %v597_v7 = vsel %vm595_vm5, %v594_v4, 0.0  ;;  %v612_v12 = vsel %vm611_vm6, %v609_v51, %v610_v52  ;;  %v613_v13 = vsel %vm611_vm6, %v610_v52, %v609_v51  ;;  %1724 = vmatpush3.msra.mxu0 %v846_v57  ;;  %v1521_v57 = vld [vmem:[%s2654_s5 + $0x1] ss:$0 sm:$0xff] }
 0x159   : > { %v569_v10 = vadd.f32 %v567_v2, %v550_v1  ;;  %v606_v15 = vmul.f32 %v1510_v0, %v593_v3  ;;  %v616_v16 = vsel %vm614_vm7, %v613_v13, 0.0  ;;  %v632_v17 = vsel %vm630_vm8, %v629_v53, %v628_v63  ;;  %1725 = vmatprep.subr.mxu0 %v845_v58  ;;  %v836_v13 = vld [vmem:[#allocation7 + $0xa8] sm:$0xff] }
 0x15a   : > { %v589_v14 = vadd.f32 %v587_v6, %v570_v5  ;;  %v605_v20 = vmul.f32 %v1510_v0, %v597_v7  ;;  %v631_v21 = vsel %vm630_vm8, %v628_v63, %v629_v53  ;;  %v625_v24 = vmul.f32 %v1511_v9, %v612_v12  ;;  %1726 = vmatpush3.msra.mxu0 %v845_v58  ;;  %v844_v5 = vld [vmem:[#allocation7 + $0xe8] sm:$0xff]  ;;  %v843_v6 = vld [vmem:[#allocation7 + $0xe0] sm:$0xff]  ;;  %v842_v7 = vld [vmem:[#allocation7 + $0xd8] sm:$0xff] }
 0x15b   : > { %v588_v19 = vadd.f32 %v586_v11, %v569_v10  ;;  %v635_v25 = vsel %vm633_vm10, %v632_v17, 0.0  ;;  %v651_v26 = vsel %vm649_vm9, %v648_v54, %v647_v8  ;;  %v624_v29 = vmul.f32 %v1511_v9, %v616_v16  ;;  %1727 = vmatprep.subr.mxu0 %v844_v5  ;;  %v840_v9 = vld [vmem:[#allocation7 + $0xc8] sm:$0xff]  ;;  %v839_v10 = vld [vmem:[#allocation7 + $0xc0] sm:$0xff]  ;;  %v838_v11 = vld [vmem:[#allocation7 + $0xb8] sm:$0xff] }
 0x15c   : > { %v608_v23 = vadd.f32 %v606_v15, %v589_v14  ;;  %v650_v30 = vsel %vm649_vm9, %v647_v8, %v648_v54  ;;  %v667_v31 = vrot.slane %v2411_v39, 1  ;;  %v644_v33 = vmul.f32 %v1512_v18, %v631_v21  ;;  %1728 = vmatpush3.msra.mxu0 %v844_v5  ;;  %v841_v8 = vld [vmem:[#allocation7 + $0xd0] sm:$0xff]  ;;  %v835_v14 = vld [vmem:[#allocation7 + $0xa0] sm:$0xff]  ;;  %v834_v15 = vld [vmem:[#allocation7 + $0x98] sm:$0xff] }
 0x15d   : > { %v607_v28 = vadd.f32 %v605_v20, %v588_v19  ;;  %v654_v37 = vsel %vm652_vm11, %v651_v26, 0.0  ;;  %v643_v41 = vmul.f32 %v1512_v18, %v635_v25  ;;  %v663_v45 = vmul.f32 %v1513_v27, %v650_v30  ;;  %1729 = vmatprep.subr.mxu0 %v843_v6  ;;  %v837_v12 = vld [vmem:[#allocation7 + $0xb0] sm:$0xff]  ;;  %v832_v17 = vld [vmem:[#allocation7 + $0x88] sm:$0xff]  ;;  %v831_v18 = vld [vmem:[#allocation7 + $0x80] sm:$0xff] }
 0x15e   : > { %v627_v32 = vadd.f32 %v625_v24, %v608_v23  ;;  %v669_v42 = vsel %vm668_vm12, %v666_v22, %v667_v31  ;;  %v670_v43 = vsel %vm668_vm12, %v667_v31, %v666_v22  ;;  %v662_v47 = vmul.f32 %v1513_v27, %v654_v37  ;;  %1730 = vmatpush3.msra.mxu0 %v843_v6  ;;  %v833_v16 = vld [vmem:[#allocation7 + $0x90] sm:$0xff]  ;;  %v946_v19 = vld [vmem:[#allocation8 + $0xf8] sm:$0xff]  ;;  %v944_v21 = vld [vmem:[#allocation8 + $0xe8] sm:$0xff] }
 0x15f   : > { %v626_v40 = vadd.f32 %v624_v29, %v607_v28  ;;  %v673_v39 = vsel %vm671_vm13, %v670_v43, 0.0  ;;  %v682_v49 = vmul.f32 %v1514_v38, %v669_v42  ;;  %v2498_v59 = vand.u32 127, %v411_v34  ;;  %1731 = vmatprep.subr.mxu0 %v842_v7  ;;  %v945_v20 = vld [vmem:[#allocation8 + $0xf0] sm:$0xff]  ;;  %1758 = vmatprep.subr.mxu1 %v946_v19  ;;  %v943_v22 = vld [vmem:[#allocation8 + $0xe0] sm:$0xff]  ;;  %v942_v23 = vld [vmem:[#allocation8 + $0xd8] sm:$0xff] }
 0x160   : > { %v646_v44 = vadd.f32 %v644_v33, %v627_v32  ;;  %v681_v51 = vmul.f32 %v1514_v38, %v673_v39  ;;  %1732 = vmatpush3.msra.mxu0 %v842_v7  ;;  %1759 = vmatpush3.msra.mxu1 %v946_v19  ;;  %v941_v24 = vld [vmem:[#allocation8 + $0xd0] sm:$0xff]  ;;  %v940_v25 = vld [vmem:[#allocation8 + $0xc8] sm:$0xff]  ;;  %v939_v26 = vld [vmem:[#allocation8 + $0xc0] sm:$0xff] }
 0x161   : > { %v645_v46 = vadd.f32 %v643_v41, %v626_v40  ;;  %vm793_vm14 = vcmp.lt.s32.totalorder %v2498_v59, 64  ;;  %1733 = vmatprep.subr.mxu0 %v841_v8  ;;  %1760 = vmatprep.subr.mxu1 %v945_v20  ;;  %v938_v27 = vld [vmem:[#allocation8 + $0xb8] sm:$0xff]  ;;  %v937_v28 = vld [vmem:[#allocation8 + $0xb0] sm:$0xff]  ;;  %v936_v29 = vld [vmem:[#allocation8 + $0xa8] sm:$0xff]  ;;  %vm1280_vm15 = vcmp.lt.s32.totalorder %v2498_v59, 32 }
 0x162   : > { %v665_v48 = vadd.f32 %v663_v45, %v646_v44  ;;  %1734 = vmatpush3.msra.mxu0 %v841_v8  ;;  %1761 = vmatpush3.msra.mxu1 %v945_v20  ;;  %v935_v30 = vld [vmem:[#allocation8 + $0xa0] sm:$0xff]  ;;  %v934_v31 = vld [vmem:[#allocation8 + $0x98] sm:$0xff] }
 0x163   : > { %v664_v50 = vadd.f32 %v662_v47, %v645_v46  ;;  %1735 = vmatprep.subr.mxu0 %v840_v9  ;;  %1762 = vmatprep.subr.mxu1 %v944_v21  ;;  %v1516_v43 = vld [vmem:[%s2655_s6] ss:$0 sm:$0xff]  ;;  %v1079_v19 = vld [vmem:[#allocation7 + $0x120] sm:$0xff] }
 0x164   : > { %v684_v52 = vadd.f32 %v682_v49, %v665_v48  ;;  %1736 = vmatpush3.msra.mxu0 %v840_v9  ;;  %1763 = vmatpush3.msra.mxu1 %v944_v21  ;;  %v1517_v45 = vld [vmem:[%s2656_s7] ss:$0 sm:$0xff]  ;;  %v1077_v21 = vld [vmem:[#allocation7 + $0x110] sm:$0xff] }
 0x165   : > { %v683_v53 = vadd.f32 %v681_v51, %v664_v50  ;;  %1737 = vmatprep.subr.mxu0 %v839_v10  ;;  %1764 = vmatprep.subr.mxu1 %v943_v22  ;;  %v933_v51 = vld [vmem:[#allocation8 + $0x90] sm:$0xff]  ;;  %v1078_v20 = vld [vmem:[#allocation7 + $0x118] sm:$0xff] }
 0x166   : > { %686 = vst [vmem:[%s2490_s14 + $0x8] sm:$0xff] %v684_v52  ;;  %1738 = vmatpush3.msra.mxu0 %v839_v10  ;;  %1765 = vmatpush3.msra.mxu1 %v943_v22  ;;  %v932_v52 = vld [vmem:[#allocation8 + $0x88] sm:$0xff] }
 0x167   : > { %685 = vst [vmem:[%s2490_s14] sm:$0xff] %v683_v53  ;;  %1739 = vmatprep.subr.mxu0 %v838_v11  ;;  %1766 = vmatprep.subr.mxu1 %v942_v23  ;;  %v931_v53 = vld [vmem:[#allocation8 + $0x80] sm:$0xff]  ;;  %v1076_v22 = vld [vmem:[#allocation7 + $0x108] sm:$0xff] }
 0x168   : > { %1740 = vmatpush3.msra.mxu0 %v838_v11  ;;  %1767 = vmatpush3.msra.mxu1 %v942_v23  ;;  %v1087_v11 = vld [vmem:[#allocation7 + $0x160] sm:$0xff] }
 0x169   : > { %1741 = vmatprep.subr.mxu0 %v837_v12  ;;  %1768 = vmatprep.subr.mxu1 %v941_v24  ;;  %v1075_v23 = vld [vmem:[#allocation7 + $0x100] sm:$0xff] }
 0x16a   : > { %1742 = vmatpush3.msra.mxu0 %v837_v12  ;;  %1769 = vmatpush3.msra.mxu1 %v941_v24  ;;  %v1086_v12 = vld [vmem:[#allocation7 + $0x158] sm:$0xff] }
 0x16b   : > { %1743 = vmatprep.subr.mxu0 %v836_v13  ;;  %1770 = vmatprep.subr.mxu1 %v940_v25  ;;  %v1190_v24 = vld [vmem:[#allocation8 + $0x178] sm:$0xff] }
 0x16c   : > { %1744 = vmatpush3.msra.mxu0 %v836_v13  ;;  %1771 = vmatpush3.msra.mxu1 %v940_v25  ;;  %v1085_v13 = vld [vmem:[#allocation7 + $0x150] sm:$0xff] }
 0x16d   : > { %1745 = vmatprep.subr.mxu0 %v835_v14  ;;  %1772 = vmatprep.subr.mxu1 %v939_v26  ;;  %v1189_v25 = vld [vmem:[#allocation8 + $0x170] sm:$0xff] }
 0x16e   : > { %1746 = vmatpush3.msra.mxu0 %v835_v14  ;;  %1773 = vmatpush3.msra.mxu1 %v939_v26  ;;  %v1084_v14 = vld [vmem:[#allocation7 + $0x148] sm:$0xff] }
 0x16f   : > { %1747 = vmatprep.subr.mxu0 %v834_v15  ;;  %1774 = vmatprep.subr.mxu1 %v938_v27  ;;  %v1188_v26 = vld [vmem:[#allocation8 + $0x168] sm:$0xff] }
 0x170   : > { %1748 = vmatpush3.msra.mxu0 %v834_v15  ;;  %1775 = vmatpush3.msra.mxu1 %v938_v27  ;;  %v1083_v15 = vld [vmem:[#allocation7 + $0x140] sm:$0xff] }
 0x171   : > { %1749 = vmatprep.subr.mxu0 %v833_v16  ;;  %1776 = vmatprep.subr.mxu1 %v937_v28  ;;  %v1187_v27 = vld [vmem:[#allocation8 + $0x160] sm:$0xff] }
 0x172   : > { %1750 = vmatpush3.msra.mxu0 %v833_v16  ;;  %1777 = vmatpush3.msra.mxu1 %v937_v28  ;;  %v1082_v16 = vld [vmem:[#allocation7 + $0x138] sm:$0xff] }
 0x173   : > { %1751 = vmatprep.subr.mxu0 %v832_v17  ;;  %1778 = vmatprep.subr.mxu1 %v936_v29  ;;  %v1186_v28 = vld [vmem:[#allocation8 + $0x158] sm:$0xff] }
 0x174   : > { %1752 = vmatpush3.msra.mxu0 %v832_v17  ;;  %1779 = vmatpush3.msra.mxu1 %v936_v29  ;;  %v1081_v17 = vld [vmem:[#allocation7 + $0x130] sm:$0xff] }
 0x175   : > { %1753 = vmatprep.subr.mxu0 %v831_v18  ;;  %1780 = vmatprep.subr.mxu1 %v935_v30  ;;  %v1185_v29 = vld [vmem:[#allocation8 + $0x150] sm:$0xff] }
 0x176   : > { %1754 = vmatpush3.msra.mxu0 %v831_v18  ;;  %1781 = vmatpush3.msra.mxu1 %v935_v30  ;;  %v1080_v18 = vld [vmem:[#allocation7 + $0x128] sm:$0xff] }
 0x177   : > { %1782 = vmatprep.subr.mxu1 %v934_v31  ;;  %v1184_v30 = vld [vmem:[#allocation8 + $0x148] sm:$0xff] }
 0x178   : > { %1783 = vmatpush3.msra.mxu1 %v934_v31  ;;  %v1183_v31 = vld [vmem:[#allocation8 + $0x140] sm:$0xff] }
 0x179   : > { %1784 = vmatprep.subr.mxu1 %v933_v51 }
 0x17a   : > { %1785 = vmatpush3.msra.mxu1 %v933_v51 }
 0x17b   : > { %1786 = vmatprep.subr.mxu1 %v932_v52 }
 0x17c   : > { %1787 = vmatpush3.msra.mxu1 %v932_v52 }
 0x17d   : > { %1788 = vmatprep.subr.mxu1 %v931_v53 }
 0x17e   : > { %1789 = vmatpush3.msra.mxu1 %v931_v53  ;;  %v1525_v53 = vld [vmem:[%s2656_s7 + $0x1] ss:$0 sm:$0xff] }
 0x17f   : > { %1828 = vmatprep.subr.mxu1 %v1190_v24 }
 0x214   : > { %v1722_v35 = vpop.f32.mrf.mxu1 }
 0x215   : > { %v782_v56 = vadd.f32 %v1722_v35, %v1515_v36 }
 0x216   : > { %v776_v54 = vpop.f32.mrf.mxu1 }
 0x217   : > { %v777_v55 = vadd.f32 %v1515_v36, %v776_v54  ;;  %v1519_v36 = vld [vmem:[%s2652_s3 + $0x1] ss:$0 sm:$0xff] }
 0x219   : > { %787 = vadd.xlane.f32.xlu0 %v777_v55 }
 0x21d   : > { %789 = vadd.xlane.f32.xlu0 %v782_v56 }
 0x2a2   : > { %v788_v60 = vpop.xlane.xlu0 %787 }
 0x2a3   : > { %v791_v61 = vmul.f32 0.015625, %v788_v60 }
 0x2a5   : > { %v794_v62 = vsub.f32 %v777_v55, %v791_v61 }
 0x2a6   : > { %v790_v63 = vpop.xlane.xlu0 %789 }
 0x2a7   : > { %v792_v0 = vmul.f32 0.015625, %v790_v63  ;;  %v2503_v1 = vsel %vm793_vm14, %v794_v62, 0.0  ;;  %v1090_v63 = vld [vmem:[#allocation7 + $0x178] sm:$0xff] }
 0x2a8   : > { %v798_v2 = vmul.f32 %v2503_v1, %v2503_v1  ;;  %1793 = vmatprep.subr.mxu0 %v1090_v63 }
 0x2a9   : > { %v795_v3 = vsub.f32 %v782_v56, %v792_v0  ;;  %v1089_v0 = vld [vmem:[#allocation7 + $0x170] sm:$0xff] }
 0x2aa   : > { %800 = vadd.xlane.f32.xlu1 %v798_v2 }
 0x2ab   : > { %v2509_v34 = vsel %vm793_vm14, %v795_v3, 0.0 }
 0x2ac   : > { %v799_v4 = vmul.f32 %v2509_v34, %v2509_v34 }
 0x2ae   : > { %802 = vadd.xlane.f32.xlu1 %v799_v4 }
 0x333   : > { %v801_v32 = vpop.xlane.xlu1 %800 }
 0x334   : > { %v804_v33 = vmul.f32 0.015625, %v801_v32  ;;  %v1182_v32 = vld [vmem:[#allocation8 + $0x138] sm:$0xff] }
 0x336   : > { %v806_v37 = vadd.f32 1e-05, %v804_v33  ;;  %v1181_v33 = vld [vmem:[#allocation8 + $0x130] sm:$0xff] }
 0x337   : > { %v803_v38 = vpop.xlane.xlu1 %802 }
 0x338   : > { %1951 = vrsqrt.f32 %v806_v37  ;;  %v805_v40 = vmul.f32 0.015625, %v803_v38  ;;  %v1180_v37 = vld [vmem:[#allocation8 + $0x128] sm:$0xff]  ;;  %v1179_v38 = vld [vmem:[#allocation8 + $0x120] sm:$0xff] }
 0x33a   : > { %v807_v41 = vadd.f32 1e-05, %v805_v40  ;;  %v1178_v40 = vld [vmem:[#allocation8 + $0x118] sm:$0xff] }
 0x33c   : > { %1953 = vrsqrt.f32 %v807_v41 }
 0x345   : > { %v1952_v42 = vpop.eup %1951 }
 0x346   : > { %v810_v44 = vmul.f32 %v1952_v42, %v2503_v1  ;;  %v1088_v1 = vld [vmem:[#allocation7 + $0x168] sm:$0xff] }
 0x348   : > { %v819_v39 = vmul.f32 %v1516_v43, %v810_v44 }
 0x349   : > { %v1954_v46 = vpop.eup %1953 }
 0x34a   : > { %v811_v47 = vmul.f32 %v1954_v46, %v2509_v34  ;;  %v828_v48 = vadd.f32 %v1517_v45, %v819_v39 }
 0x34c   : > { %v820_v49 = vmul.f32 %v1516_v43, %v811_v47  ;;  %1755 = vmatprep.mubr.f32.mxu0 %v828_v48  ;;  %v1523_v48 = vld [vmem:[%s2655_s6 + $0x1] ss:$0 sm:$0xff] }
 0x34e   : > { %v829_v50 = vadd.f32 %v1517_v45, %v820_v49 }
 0x350   : > { %1756 = vmatmul.mubr.f32.vlgmr.msra.gmra.mxu0 %v829_v50 }
 0x351   : > { %1794 = vmatpush3.msra.mxu0 %v1090_v63  ;;  %v1529_v63 = vld [vmem:[%s2654_s5 + $0x2] ss:$0 sm:$0xff] }
 0x352   : > { %1795 = vmatprep.subr.mxu0 %v1089_v0 }
 0x353   : > { %1796 = vmatpush3.msra.mxu0 %v1089_v0 }
 0x354   : > { %1797 = vmatprep.subr.mxu0 %v1088_v1 }
 0x355   : > { %1798 = vmatpush3.msra.mxu0 %v1088_v1 }
 0x356   : > { %1799 = vmatprep.subr.mxu0 %v1087_v11 }
 0x357   : > { %1800 = vmatpush3.msra.mxu0 %v1087_v11 }
 0x358   : > { %1801 = vmatprep.subr.mxu0 %v1086_v12 }
 0x359   : > { %1802 = vmatpush3.msra.mxu0 %v1086_v12 }
 0x35a   : > { %1803 = vmatprep.subr.mxu0 %v1085_v13 }
 0x35b   : > { %1804 = vmatpush3.msra.mxu0 %v1085_v13 }
 0x35c   : > { %1805 = vmatprep.subr.mxu0 %v1084_v14 }
 0x35d   : > { %1806 = vmatpush3.msra.mxu0 %v1084_v14 }
 0x35e   : > { %1807 = vmatprep.subr.mxu0 %v1083_v15 }
 0x35f   : > { %1808 = vmatpush3.msra.mxu0 %v1083_v15 }
 0x360   : > { %1809 = vmatprep.subr.mxu0 %v1082_v16 }
 0x361   : > { %1810 = vmatpush3.msra.mxu0 %v1082_v16 }
 0x362   : > { %1811 = vmatprep.subr.mxu0 %v1081_v17 }
 0x363   : > { %1812 = vmatpush3.msra.mxu0 %v1081_v17 }
 0x364   : > { %1813 = vmatprep.subr.mxu0 %v1080_v18 }
 0x365   : > { %1814 = vmatpush3.msra.mxu0 %v1080_v18 }
 0x366   : > { %1815 = vmatprep.subr.mxu0 %v1079_v19 }
 0x367   : > { %1816 = vmatpush3.msra.mxu0 %v1079_v19 }
 0x368   : > { %1817 = vmatprep.subr.mxu0 %v1078_v20 }
 0x369   : > { %1818 = vmatpush3.msra.mxu0 %v1078_v20 }
 0x36a   : > { %1819 = vmatprep.subr.mxu0 %v1077_v21 }
 0x36b   : > { %1820 = vmatpush3.msra.mxu0 %v1077_v21 }
 0x36c   : > { %1821 = vmatprep.subr.mxu0 %v1076_v22 }
 0x36d   : > { %1822 = vmatpush3.msra.mxu0 %v1076_v22 }
 0x36e   : > { %1823 = vmatprep.subr.mxu0 %v1075_v23 }
 0x36f   : > { %1824 = vmatpush3.msra.mxu0 %v1075_v23 }
 0x410   : > { %v1757_v35 = vpop.f32.mrf.mxu0 }
 0x411   : > { %v927_v56 = vadd.f32 %v1757_v35, %v1519_v36 }
 0x412   : > { %v921_v54 = vpop.f32.mrf.mxu0 }
 0x413   : > { %v922_v55 = vadd.f32 %v1519_v36, %v921_v54  ;;  %v1177_v54 = vld [vmem:[#allocation8 + $0x110] sm:$0xff] }
 0x415   : > { %1790 = vmatprep.mubr.f32.mxu1 %v922_v55  ;;  %v1176_v55 = vld [vmem:[#allocation8 + $0x108] sm:$0xff] }
 0x416   : > { %1791 = vmatmul.mubr.f32.vlgmr.msra.gmra.mxu1 %v927_v56  ;;  %v1175_v56 = vld [vmem:[#allocation8 + $0x100] sm:$0xff] }
 0x417   : > { %1829 = vmatpush3.msra.mxu1 %v1190_v24 }
 0x418   : > { %1830 = vmatprep.subr.mxu1 %v1189_v25 }
 0x419   : > { %1831 = vmatpush3.msra.mxu1 %v1189_v25 }
 0x41a   : > { %1832 = vmatprep.subr.mxu1 %v1188_v26 }
 0x41b   : > { %1833 = vmatpush3.msra.mxu1 %v1188_v26 }
 0x41c   : > { %1834 = vmatprep.subr.mxu1 %v1187_v27 }
 0x41d   : > { %1835 = vmatpush3.msra.mxu1 %v1187_v27 }
 0x41e   : > { %1836 = vmatprep.subr.mxu1 %v1186_v28 }
 0x41f   : > { %1837 = vmatpush3.msra.mxu1 %v1186_v28 }
 0x420   : > { %1838 = vmatprep.subr.mxu1 %v1185_v29 }
 0x421   : > { %1839 = vmatpush3.msra.mxu1 %v1185_v29 }
 0x422   : > { %1840 = vmatprep.subr.mxu1 %v1184_v30 }
 0x423   : > { %1841 = vmatpush3.msra.mxu1 %v1184_v30 }
 0x424   : > { %1842 = vmatprep.subr.mxu1 %v1183_v31 }
 0x425   : > { %1843 = vmatpush3.msra.mxu1 %v1183_v31 }
 0x426   : > { %1844 = vmatprep.subr.mxu1 %v1182_v32 }
 0x427   : > { %1845 = vmatpush3.msra.mxu1 %v1182_v32 }
 0x428   : > { %1846 = vmatprep.subr.mxu1 %v1181_v33 }
 0x429   : > { %1847 = vmatpush3.msra.mxu1 %v1181_v33 }
 0x42a   : > { %1848 = vmatprep.subr.mxu1 %v1180_v37 }
 0x42b   : > { %1849 = vmatpush3.msra.mxu1 %v1180_v37 }
 0x42c   : > { %1850 = vmatprep.subr.mxu1 %v1179_v38 }
 0x42d   : > { %1851 = vmatpush3.msra.mxu1 %v1179_v38 }
 0x42e   : > { %1852 = vmatprep.subr.mxu1 %v1178_v40 }
 0x42f   : > { %1853 = vmatpush3.msra.mxu1 %v1178_v40 }
 0x430   : > { %1854 = vmatprep.subr.mxu1 %v1177_v54 }
 0x431   : > { %1855 = vmatpush3.msra.mxu1 %v1177_v54 }
 0x432   : > { %1856 = vmatprep.subr.mxu1 %v1176_v55 }
 0x433   : > { %1857 = vmatpush3.msra.mxu1 %v1176_v55 }
 0x434   : > { %1858 = vmatprep.subr.mxu1 %v1175_v56 }
 0x435   : > { %1859 = vmatpush3.msra.mxu1 %v1175_v56 }
 0x4d6   : > { %v1792_v58 = vpop.f32.mrf.mxu1 }
 0x4d7   : > { %v1027_v60 = vadd.f32 %v1792_v58, %v1521_v57  ;;  %v1527_v58 = vld [vmem:[%s2652_s3 + $0x2] ss:$0 sm:$0xff] }
 0x4d8   : > { %v1021_v61 = vpop.f32.mrf.mxu1 }
 0x4d9   : > { %v1022_v62 = vadd.f32 %v1521_v57, %v1021_v61  ;;  %1032 = vadd.xlane.f32.xlu1 %v1027_v60 }
 0x4db   : > { %1030 = vadd.xlane.f32.xlu0 %v1022_v62 }
 0x562   : > { %v1033_v2 = vpop.xlane.xlu1 %1032 }
 0x563   : > { %v1035_v3 = vmul.f32 0.015625, %v1033_v2 }
 0x564   : > { %v1031_v34 = vpop.xlane.xlu0 %1030 }
 0x565   : > { %v1037_v4 = vsub.f32 %v1027_v60, %v1035_v3  ;;  %v1034_v5 = vmul.f32 0.015625, %v1031_v34 }
 0x567   : > { %v1036_v6 = vsub.f32 %v1022_v62, %v1034_v5  ;;  %v2529_v7 = vsel %vm793_vm14, %v1037_v4, 0.0 }
 0x568   : > { %v1041_v8 = vmul.f32 %v2529_v7, %v2529_v7 }
 0x569   : > { %v2535_v9 = vsel %vm793_vm14, %v1036_v6, 0.0 }
 0x56a   : > { %1044 = vadd.xlane.f32.xlu1 %v1041_v8  ;;  %v1040_v10 = vmul.f32 %v2535_v9, %v2535_v9 }
 0x56c   : > { %1042 = vadd.xlane.f32.xlu0 %v1040_v10 }
 0x5f3   : > { %v1045_v41 = vpop.xlane.xlu1 %1044 }
 0x5f4   : > { %v1047_v42 = vmul.f32 0.015625, %v1045_v41 }
 0x5f5   : > { %v1043_v43 = vpop.xlane.xlu0 %1042 }
 0x5f6   : > { %v1049_v44 = vadd.f32 1e-05, %v1047_v42  ;;  %v1046_v45 = vmul.f32 0.015625, %v1043_v43 }
 0x5f8   : > { %1955 = vrsqrt.f32 %v1049_v44  ;;  %v1048_v39 = vadd.f32 1e-05, %v1046_v45 }
 0x5fa   : > { %1957 = vrsqrt.f32 %v1048_v39 }
 0x605   : > { %v1956_v46 = vpop.eup %1955 }
 0x606   : > { %v1053_v47 = vmul.f32 %v1956_v46, %v2529_v7 }
 0x607   : > { %v1958_v49 = vpop.eup %1957 }
 0x608   : > { %v1052_v50 = vmul.f32 %v1958_v49, %v2535_v9  ;;  %v1063_v51 = vmul.f32 %v1523_v48, %v1053_v47 }
 0x60a   : > { %v1062_v52 = vmul.f32 %v1523_v48, %v1052_v50  ;;  %v1073_v36 = vadd.f32 %v1525_v53, %v1063_v51 }
 0x60c   : > { %v1072_v35 = vadd.f32 %v1525_v53, %v1062_v52 }
 0x60e   : > { %1825 = vmatprep.mubr.f32.mxu0 %v1072_v35 }
 0x60f   : > { %1826 = vmatmul.mubr.f32.vlgmr.msra.gmra.mxu0 %v1073_v36 }
 0x6cf   : > { %v1827_v57 = vpop.f32.mrf.mxu0 }
 0x6d0   : > { %v1171_v62 = vadd.f32 %v1827_v57, %v1527_v58 }
 0x6d1   : > { %v1165_v60 = vpop.f32.mrf.mxu0 }
 0x6d2   : > { %v1166_v61 = vadd.f32 %v1527_v58, %v1165_v60 }
 0x6d4   : > { %1860 = vmatprep.mubr.f32.mxu1 %v1166_v61 }
 0x6d5   : > { %1861 = vmatmul.mubr.f32.vlgmr.msra.gmra.mxu1 %v1171_v62 }
 0x795   : > { %v1862_v0 = vpop.f32.mrf.mxu1 }
 0x796   : > { %v1271_v1 = vadd.f32 %v1862_v0, %v1529_v63 }
 0x797   : > { %v1265_v2 = vpop.f32.mrf.mxu1 }
 0x798   : > { %v1266_v3 = vadd.f32 %v1529_v63, %v1265_v2  ;;  %1276 = vadd.xlane.f32.xlu1 %v1271_v1 }
 0x79a   : > { %1274 = vadd.xlane.f32.xlu0 %v1266_v3 }
 0x821   : > { %v1277_v34 = vpop.xlane.xlu1 %1276 }
 0x822   : > { %v1279_v4 = vmul.f32 0.03125, %v1277_v34 }
 0x823   : > { %v1275_v5 = vpop.xlane.xlu0 %1274 }
 0x824   : > { %v1282_v6 = vsub.f32 %v1271_v1, %v1279_v4  ;;  %v1278_v7 = vmul.f32 0.03125, %v1275_v5 }
 0x826   : > { %v1281_v8 = vsub.f32 %v1266_v3, %v1278_v7  ;;  %v1284_v9 = vsel %vm1280_vm15, %v1282_v6, 0.0 }
 0x827   : > { %v1286_v10 = vmul.f32 %v1284_v9, %v1284_v9 }
 0x828   : > { %v1283_v11 = vsel %vm1280_vm15, %v1281_v8, 0.0 }
 0x829   : > { %1289 = vadd.xlane.f32.xlu1 %v1286_v10  ;;  %v1285_v12 = vmul.f32 %v1283_v11, %v1283_v11 }
 0x82b   : > { %1287 = vadd.xlane.f32.xlu0 %v1285_v12 }
 0x82c   : > { %2082 = shalt.err (!%p2079_p9)
}
 0x82d   : > { %s2083_s14 = scalar_lea.hbm %s2560_s25, 256  ;;  %s2087_s22 = scalar_lea.hbm %s2658_s9, 512 }
 0x82e   : > { %p2084_p7 = scmp.ne.s32.totalorder %s2560_s25, %s2083_s14  ;;  %p2088_p6 = scmp.lt.s32.totalorder %s2560_s25, %s2658_s9 }
 0x82f   : > { %p2089_p11 = scmp.lt.s32.totalorder %s2087_s22, %s2083_s14 }
 0x830   : > { %p2085_p4 = pnand %p2084_p7, %p2686_p0 }
 0x831   : > { %p2090_p13 = por %p2089_p11, %p2088_p6 }
 0x832   : > { %p2086_p8 = pneg %p2085_p4 }
 0x834   : > { %p2091_p12 = pnand %p2090_p13, %p2086_p8 }
 0x836   : > { %2094 = shalt.err (!%p2091_p12)
}
 0x837   : > { %s2182_s23 = smov 128   ;;  %s2183_s26 = smov 8   ;;  %v1531_v19 = vld [vmem:[%s2655_s6 + $0x2] ss:$0 sm:$0xff] }
 0x838   : > { %1878 = dma.vmem_to_hbm [thread:$0]  (%p2686_p0), %s2563_s15, 256, %s2560_s25, %s1327_s17, %s2182_s23, %s2182_s23, %s2183_s26  }
 0x839   : > { %v1533_v22 = vld [vmem:[%s2656_s7 + $0x2] ss:$0 sm:$0xff]  ;;  %s398_s15 = scalar_lea.vmem [#allocation10], %s2382_s4  ;;  %s2603_s29 = scalar_lea.hbm %s2657_s8, %s1543_s1 }
 0x83a   : > { %s1340_s17 = sshll.u32 %s398_s15, 4  ;;  %s1322_s20 = scalar_lea.sflag [#allocation4], %s2379_s2  ;;  %s2605_s17 = int_to_ptr.vmem [resolvable:$true] %s1340_s17 }
 0x83b   : > { %s2095_s27 = scalar_lea.vmem %s2605_s17, 256  ;;  %s2184_s4 = smov [#allocation10]  }
 0x83c   : > { %p2096_p5 = scmp.ne.s32.totalorder %s2605_s17, %s2095_s27  ;;  %s2099_s14 = sshll.u32 %s2184_s4, 4  ;;  %s2100_s14 = int_to_ptr.vmem [resolvable:$false] %s2099_s14 }
 0x83d   : > { %s2101_s13 = scalar_lea.vmem %s2100_s14, 512  ;;  %p2102_p2 = scmp.lt.s32.totalorder %s2605_s17, %s2100_s14 }
 0x83e   : > { %p2097_p10 = pnand %p2096_p5, %p2686_p0  ;;  %p2103_p3 = scmp.lt.s32.totalorder %s2101_s13, %s2095_s27 }
 0x840   : > { %p2098_p1 = pneg %p2097_p10  ;;  %p2104_p9 = por %p2103_p3, %p2102_p2 }
 0x842   : > { %p2105_p7 = pnand %p2104_p9, %p2098_p1 }
 0x8b2   : > { %v1290_v59 = vpop.xlane.xlu1 %1289 }
 0x8b3   : > { %v1292_v13 = vmul.f32 0.03125, %v1290_v59 }
 0x8b4   : > { %v1288_v14 = vpop.xlane.xlu0 %1287 }
 0x8b5   : > { %v1294_v15 = vadd.f32 1e-05, %v1292_v13  ;;  %v1291_v16 = vmul.f32 0.03125, %v1288_v14 }
 0x8b7   : > { %1959 = vrsqrt.f32 %v1294_v15  ;;  %v1293_v17 = vadd.f32 1e-05, %v1291_v16 }
 0x8b9   : > { %1961 = vrsqrt.f32 %v1293_v17 }
 0x8c4   : > { %v1960_v18 = vpop.eup %1959 }
 0x8c5   : > { %v1298_v20 = vmul.f32 %v1960_v18, %v1284_v9 }
 0x8c6   : > { %v1962_v21 = vpop.eup %1961 }
 0x8c7   : > { %v1308_v23 = vmul.f32 %v1531_v19, %v1298_v20  ;;  %v1297_v24 = vmul.f32 %v1962_v21, %v1283_v11 }
 0x8c9   : > { %v1318_v25 = vadd.f32 %v1533_v22, %v1308_v23  ;;  %v1307_v26 = vmul.f32 %v1531_v19, %v1297_v24 }
 0x8cb   : > { %v1317_v27 = vadd.f32 %v1533_v22, %v1307_v26  ;;  %1320 = vst [vmem:[%s398_s15 + $0x8] sm:$0xff] %v1318_v25 }
 0x8cd   : > { %1319 = vst [vmem:[%s398_s15] sm:$0xff] %v1317_v27 }
 0x8ce   : > { %2108 = shalt.err (!%p2105_p7)
}
 0x8cf   : > { %s2109_s1 = scalar_lea.hbm %s2603_s29, 256  ;;  %s2113_s25 = scalar_lea.hbm %s2657_s8, 512 }
 0x8d0   : > { %p2110_p4 = scmp.ne.s32.totalorder %s2603_s29, %s2109_s1  ;;  %p2114_p11 = scmp.lt.s32.totalorder %s2603_s29, %s2657_s8 }
 0x8d1   : > { %p2115_p13 = scmp.lt.s32.totalorder %s2113_s25, %s2109_s1 }
 0x8d2   : > { %p2111_p8 = pnand %p2110_p4, %p2686_p0 }
 0x8d3   : > { %p2116_p12 = por %p2115_p13, %p2114_p11 }
 0x8d4   : > { %p2112_p6 = pneg %p2111_p8 }
 0x8d6   : > { %p2117_p5 = pnand %p2116_p12, %p2112_p6 }
 0x8d8   : > { %2120 = shalt.err (!%p2117_p5)
}
 0x8d9   : > { %1877 = dma.vmem_to_hbm [thread:$0]  (%p2686_p0), %s2605_s17, 256, %s2603_s29, %s1322_s20, %s2182_s23, %s2182_s23, %s2183_s26  }
 0x8da PF: > { %s1371_s22 = sand.u32 1, %s2159_s30   ;;  %p2687_p10 = scmp.ne.s32.totalorder %s2669_s16, 0 }
 0x8db   : > { %p2688_p1 = scmp.ge.s32.totalorder %s2171_s12, 2  ;;  %s1372_s27 = scalar_lea.sflag [#allocation4], %s1371_s22 }
 0x8dd   : > { %p1896_p2 = pnand %p2688_p1, %p2687_p10 }
 0x8df   : > { %p1897_p3 = pneg %p1896_p2 }
 0x8e1   : > { %2150 = dma.done.wait (%p1897_p3), %s1372_s27, 256  }
 0x8e2   : > { %2152 = vsyncadd (%p1897_p3), %s1372_s27, 4294967040  ;;  %s1381_s4 = scalar_lea.sflag [#allocation12], %s1371_s22 }
 0x8e3   : > { %2154 = dma.done.wait (%p1897_p3), %s1381_s4, 256  }
 0x8e4   : > { %2156 = vsyncadd (%p1897_p3), %s1381_s4, 4294967040  ;;  %p28_p0 = scmp.ge.s32.totalorder %s2310_s24, 4   ;;  %s2689_s30 = smov %s2163_s10 }
 0x8e5   : > { %s2690_s10 = smov %s2167_s11  ;;  %s2691_s11 = smov %s2331_s28 }
 0x8e6   : > { %s2692_s12 = smov %s2310_s24  ;;  %30 = sbr.rel (!%p28_p0) target bundleno = 13 (0xd), region = 138 }
 0x8eb   :  { %1386 = vsyncpa [#allocation3], 1 }
 0x8ec   :  { %1388 = vsyncpa [#allocation3 + $0x1], 1 }
 0x8ed   :  { %1389 = vsyncpa [#allocation6], 1 }
 0x8ee   :  { %1390 = vsyncpa [#allocation9], 1 }
 0x8ef   :  { %1391 = vsyncpa [#allocation4], 1 }
 0x8f0   :  { %1393 = vsyncpa [#allocation4 + $0x1], 1 }
 0x8f1   :  { %1394 = vsyncpa [#allocation12], 1 }
 0x8f2   :  { %1396 = vsyncpa [#allocation12 + $0x1], 1 }

</bundles_post_ra>
